<compile_context>
chip_gen: v7x
topology: tpu7x:2x2x1
jax: 0.10.0
libtpu: 0.0.40
codegen_flags: <defaults>
</compile_context>

<pallas_src>
import functools

import numpy as np
import jax
import jax.numpy as jnp
from jax.experimental import pallas as pl
from jax.experimental.pallas import tpu as pltpu


# Explicit VMEM cap: raises v5e's 16 MiB default scoped limit, matches the v6e/v7x
# 32 MiB default.  At production SAR shapes re-budget against the generation's VMEM
# (v7x: 64 MiB physical per TensorCore).
_VMEM_LIMIT_BYTES = 32 * 1024 * 1024


def _round_up(x, m):
    return ((x + m - 1) // m) * m


# ----------------------------------------------------------------------------
# Kernel 1: generic K-tiled GEMM + bias (f32 accumulator, bf16 MXU operands)
#   used for conv3x3_1 (im2col) and for the folded prediction-head projection.
# ----------------------------------------------------------------------------
def _gemm_bias_kernel(x_ref, w_ref, b_ref, o_ref, acc_ref):
    k = pl.program_id(1)

    @pl.when(k == 0)
    def _init():
        acc_ref[...] = jnp.zeros_like(acc_ref)

    acc_ref[...] += jnp.dot(x_ref[...], w_ref[...],
                            preferred_element_type=jnp.float32)

    @pl.when(k == pl.num_programs(1) - 1)
    def _finalize():
        o_ref[...] = acc_ref[...] + b_ref[...]


def gemm_bias(x, w, b, *, max_tm=512, max_tk=512):
    """out = x @ w + b, tiled over M ("parallel") and K ("arbitrary" reduction).

    x: (M, K) any float dtype; w: (K, Nout); b: (1, Nout).  Returns f32 (M, Nout).
    MXU operands are cast to bf16; accumulation is f32 in VMEM scratch.
    """
    M, K = x.shape
    Nout = w.shape[1]

    # M tiling: largest <=512-row tile (>=85% of HBM roofline per measurements),
    # tail handled by zero-padding M (extra rows sliced off afterwards).
    tm = min(max_tm, _round_up(M, 8))
    Mpad = _round_up(M, tm)

    # K tiling: keep the per-step input block bounded at production shapes.
    tk = K
    if K > max_tk:
        for cand in (512, 384, 256, 128):
            if K % cand == 0:
                tk = cand
                break
        # TODO(synk): pad K when it has no 128-multiple divisor <= max_tk.

    xp = x if Mpad == M else jnp.pad(x, ((0, Mpad - M), (0, 0)))

    out = pl.pallas_call(
        _gemm_bias_kernel,
        out_shape=jax.ShapeDtypeStruct((Mpad, Nout), jnp.float32),
        grid=(Mpad // tm, K // tk),
        in_specs=[
            pl.BlockSpec((tm, tk), lambda i, k: (i, k)),
            pl.BlockSpec((tk, Nout), lambda i, k: (k, 0)),
            pl.BlockSpec((1, Nout), lambda i, k: (0, 0),
                         pipeline_mode=pl.Buffered(1)),
        ],
        out_specs=pl.BlockSpec((tm, Nout), lambda i, k: (i, 0)),
        scratch_shapes=[pltpu.VMEM((tm, Nout), jnp.float32)],
        compiler_params=pltpu.CompilerParams(
            dimension_semantics=("parallel", "arbitrary"),
            vmem_limit_bytes=_VMEM_LIMIT_BYTES),
    )(xp.astype(jnp.bfloat16), w.astype(jnp.bfloat16), b.astype(jnp.float32))
    return out[:M]


def conv3x3(feat_nhwc, w, b):
    """3x3 'same' conv (attention key projection) as im2col + K-tiled Pallas GEMM.

    feat_nhwc: (N,H,W,Cin); w: (3,3,Cin,dk) HWIO; b: (1,dk).
    """
    N, H, W, Cin = feat_nhwc.shape
    dk = w.shape[-1]
    fp = jnp.pad(feat_nhwc, ((0, 0), (1, 1), (1, 1), (0, 0)))
    # im2col (data-rearrangement glue); the MACs run on the MXU inside the kernel,
    # accumulated over K in Cin-sized (or 512-wide) chunks.
    # TODO(synk): im2col still replicates the input ~9x in HBM; a halo-windowed
    #             BlockSpec / 9-shifted-GEMM formulation would remove that traffic.
    cols = [fp[:, dy:dy + H, dx:dx + W, :] for dy in range(3) for dx in range(3)]
    patches = jnp.concatenate(cols, axis=-1).reshape(N * H * W, 9 * Cin)
    out2d = gemm_bias(patches, w.reshape(9 * Cin, dk), b)
    return out2d.reshape(N, H, W, dk)


# ----------------------------------------------------------------------------
# Kernel 2: fused greedy decode, grid = (batch_blocks "parallel", T+1 "arbitrary")
#   t == 0 : consumes out_enc (holistic feature), emits SOS id (logits row discarded)
#   t >= 1 : consumes embedding(previous sampled id), emits logits + argmax id
# ----------------------------------------------------------------------------
def _greedy_decode_kernel(out_enc_ref, emb_ref, key_ref, fproj_ref,
                          wih0_ref, whh0_ref, b0_ref,
                          wih1_ref, whh1_ref, b1_ref,
                          qw_ref, qb_ref, ew_ref, eb_ref, pb_ref,
                          logits_ref, ids_ref,
                          h0_ref, c0_ref, h1_ref, c1_ref, xbuf_ref, prev_ref,
                          *, num_classes, sos_tkn_idx):
    t = pl.program_id(1)
    Nb = out_enc_ref.shape[0]
    Cpad = pb_ref.shape[1]

    cls_iota = jax.lax.broadcasted_iota(jnp.int32, (Nb, Cpad), 1)

    @pl.when(t == 0)
    def _init_state():
        h0_ref[...] = jnp.zeros_like(h0_ref)
        c0_ref[...] = jnp.zeros_like(c0_ref)
        h1_ref[...] = jnp.zeros_like(h1_ref)
        c1_ref[...] = jnp.zeros_like(c1_ref)
        prev_ref[...] = jnp.full((Nb, 1), sos_tkn_idx, jnp.int32)
        xbuf_ref[...] = out_enc_ref[...]     # step 0 consumes the holistic feature

    @pl.when(t != 0)
    def _embed_prev():
        # embedding(prev id) as one-hot (bf16) x table (bf16) on the MXU (no gather)
        onehot = (prev_ref[...] == cls_iota).astype(jnp.bfloat16)
        xbuf_ref[...] = jnp.dot(onehot, emb_ref[...],
                                preferred_element_type=jnp.float32)

    x = xbuf_ref[...]

    # ---- 2-layer LSTM; fused gate weights (in,4H)/(H,4H), gate order (i,f,g,o) ----
    def lstm_cell(inp, h, c, wih_ref, whh_ref, b_ref):
        hid = whh_ref.shape[0]
        gates = (jnp.dot(inp.astype(jnp.bfloat16), wih_ref[...],
                         preferred_element_type=jnp.float32)
                 + jnp.dot(h.astype(jnp.bfloat16), whh_ref[...],
                           preferred_element_type=jnp.float32)
                 + b_ref[...])
        i_g = jax.nn.sigmoid(gates[:, 0 * hid:1 * hid])
        f_g = jax.nn.sigmoid(gates[:, 1 * hid:2 * hid])
        g_g = jnp.tanh(gates[:, 2 * hid:3 * hid])
        o_g = jax.nn.sigmoid(gates[:, 3 * hid:4 * hid])
        c_new = f_g * c + i_g * g_g
        h_new = o_g * jnp.tanh(c_new)
        return h_new, c_new

    h0, c0 = lstm_cell(x, h0_ref[...], c0_ref[...], wih0_ref, whh0_ref, b0_ref)
    h1, c1 = lstm_cell(h0, h1_ref[...], c1_ref[...], wih1_ref, whh1_ref, b1_ref)
    h0_ref[...] = h0
    c0_ref[...] = c0
    h1_ref[...] = h1
    c1_ref[...] = c1

    # ---- 2D attention, lane-dense: spatial extent S = H*W on the lane axis ----
    q = (jnp.dot(h1.astype(jnp.bfloat16), qw_ref[...],
                 preferred_element_type=jnp.float32) + qb_ref[...])      # (Nb, d_k)
    aw = jnp.tanh(key_ref[...] + q[:, None, :])                          # (Nb, S, d_k)
    e = jnp.sum(aw * ew_ref[...], axis=-1) + eb_ref[...]                 # (Nb, S)
    m = jnp.max(e, axis=-1, keepdims=True)
    p = jnp.exp(e - m)
    attn = p / jnp.sum(p, axis=-1, keepdims=True)                        # exact softmax

    # ---- prediction head folded into the pooling: logits = attn @ (feat @ W) + b ----
    logits = jnp.einsum("nqs,nsc->nqc",
                        attn[:, None, :].astype(jnp.bfloat16), fproj_ref[...],
                        preferred_element_type=jnp.float32)[:, 0, :] + pb_ref[...]
    logits_ref[0] = logits                                               # (Nb, Cpad)

    # ---- greedy argmax over true classes (first-max tie-break, like torch.max) ----
    valid = cls_iota < num_classes
    masked = jnp.where(valid, logits, -jnp.inf)
    mx = jnp.max(masked, axis=-1, keepdims=True)
    first_idx = jnp.min(
        jnp.where(masked == mx, cls_iota.astype(jnp.float32), float(Cpad)),
        axis=-1, keepdims=True)
    prev_ref[...] = first_idx.astype(jnp.int32)                          # (Nb, 1)

    @pl.when(t == 0)
    def _emit_sos():
        prev_ref[...] = jnp.full((Nb, 1), sos_tkn_idx, jnp.int32)

    ids_ref[0] = prev_ref[...]


def greedy_decode(out_enc, emb_pad, key_s, feat_proj, params_k, *,
                  T, num_classes, sos_tkn_idx):
    """Fused greedy decode.  Returns (logits (T+1,N,Cpad) f32, ids (T+1,N,1) i32)."""
    N, d_enc = out_enc.shape
    S, d_k = key_s.shape[1:]
    Cpad = feat_proj.shape[-1]
    hidden = d_enc
    H4 = 4 * hidden

    # Batch-parallel leading grid axis: both TensorCores on v7x when the batch
    # block satisfies the (8,128) constraint; otherwise one block (still correct).
    bn = N // 2 if (N % 16 == 0) else N
    nb = N // bn

    kernel = functools.partial(_greedy_decode_kernel,
                               num_classes=num_classes,
                               sos_tkn_idx=sos_tkn_idx)

    inv = pl.Buffered(1)     # step-invariant inputs: single-buffer (halves VMEM)
    c2 = lambda b, t: (0, 0)
    c3 = lambda b, t: (0, 0, 0)

    return pl.pallas_call(
        kernel,
        out_shape=(jax.ShapeDtypeStruct((T + 1, N, Cpad), jnp.float32),
                   jax.ShapeDtypeStruct((T + 1, N, 1), jnp.int32)),
        grid=(nb, T + 1),
        in_specs=[
            pl.BlockSpec((bn, d_enc), lambda b, t: (b, 0), pipeline_mode=inv),    # out_enc
            pl.BlockSpec((Cpad, d_enc), c2, pipeline_mode=inv),                   # embedding (bf16)
            pl.BlockSpec((bn, S, d_k), lambda b, t: (b, 0, 0), pipeline_mode=inv),# attn key
            pl.BlockSpec((bn, S, Cpad), lambda b, t: (b, 0, 0), pipeline_mode=inv),# feat @ predW (bf16)
            pl.BlockSpec((d_enc, H4), c2, pipeline_mode=inv),                     # LSTM L0 w_ih
            pl.BlockSpec((hidden, H4), c2, pipeline_mode=inv),                    # LSTM L0 w_hh
            pl.BlockSpec((1, H4), c2, pipeline_mode=inv),                         # LSTM L0 bias
            pl.BlockSpec((hidden, H4), c2, pipeline_mode=inv),                    # LSTM L1 w_ih
            pl.BlockSpec((hidden, H4), c2, pipeline_mode=inv),                    # LSTM L1 w_hh
            pl.BlockSpec((1, H4), c2, pipeline_mode=inv),                         # LSTM L1 bias
            pl.BlockSpec((hidden, d_k), c2, pipeline_mode=inv),                   # conv1x1_1 weight
            pl.BlockSpec((1, d_k), c2, pipeline_mode=inv),                        # conv1x1_1 bias
            pl.BlockSpec((1, 1, d_k), c3, pipeline_mode=inv),                     # conv1x1_2 weight
            pl.BlockSpec((1, 1), c2, pipeline_mode=inv),                          # conv1x1_2 bias
            pl.BlockSpec((1, Cpad), c2, pipeline_mode=inv),                       # prediction bias (padded)
        ],
        out_specs=[
            pl.BlockSpec((1, bn, Cpad), lambda b, t: (t, b, 0)),
            pl.BlockSpec((1, bn, 1), lambda b, t: (t, b, 0)),
        ],
        scratch_shapes=[
            pltpu.VMEM((bn, hidden), jnp.float32),   # h0
            pltpu.VMEM((bn, hidden), jnp.float32),   # c0
            pltpu.VMEM((bn, hidden), jnp.float32),   # h1
            pltpu.VMEM((bn, hidden), jnp.float32),   # c1
            pltpu.VMEM((bn, d_enc), jnp.float32),    # per-step input buffer
            pltpu.VMEM((bn, 1), jnp.int32),          # previously sampled token id
        ],
        compiler_params=pltpu.CompilerParams(
            dimension_semantics=("parallel", "arbitrary"),  # state carried across t
            vmem_limit_bytes=_VMEM_LIMIT_BYTES),
    )(out_enc, emb_pad, key_s, feat_proj,
      params_k["wih0"], params_k["whh0"], params_k["b0"],
      params_k["wih1"], params_k["whh1"], params_k["b1"],
      params_k["q_wT"], params_k["q_b"], params_k["e_w"], params_k["e_b"],
      params_k["pred_b_pad"])


# ----------------------------------------------------------------------------
# Device-side forward: key projection + folded head projection + fused decode
# ----------------------------------------------------------------------------
@functools.partial(jax.jit, static_argnames=("max_seq_len", "sos_tkn_idx"))
def _device_forward(params, feat_nchw, out_enc, *, max_seq_len, sos_tkn_idx):
    # layout: feat arrives NCHW (PyTorch convention); kernels consume channels-last.
    feat = jnp.transpose(feat_nchw, (0, 2, 3, 1)).astype(jnp.float32)    # (N,H,W,D)
    N, H, W, d_model = feat.shape
    num_classes = params["pred_b"].shape[-1]
    d_k = params["q_b"].shape[-1]

    # attention key (conv3x3_1)
    attn_key = conv3x3(feat, params["conv3_w"], params["conv3_b"])       # (N,H,W,d_k)
    key_s = attn_key.reshape(N, H * W, d_k)

    # Pad the class dimension to a lane-dense multiple of 128 (unmasked stores).
    Cpad = _round_up(num_classes, 128)
    pad_c = Cpad - num_classes
    pred_wT_pad = jnp.pad(params["pred_wT"], ((0, 0), (0, pad_c)))
    pred_b_pad = jnp.pad(params["pred_b"], ((0, 0), (0, pad_c)))
    emb_pad = jnp.pad(params["emb"], ((0, pad_c), (0, 0))).astype(jnp.bfloat16)

    # Fold the linear prediction head into the attention pooling:
    # (attn @ feat) @ W == attn @ (feat @ W); project once with the Pallas GEMM.
    feat_proj = gemm_bias(feat.reshape(N * H * W, d_model), pred_wT_pad,
                          jnp.zeros((1, Cpad), jnp.float32))
    feat_proj = feat_proj.reshape(N, H * W, Cpad).astype(jnp.bfloat16)

    bf = lambda a: a.astype(jnp.bfloat16)
    params_k = {
        "wih0": bf(params["wih0"]), "whh0": bf(params["whh0"]), "b0": params["b0"],
        "wih1": bf(params["wih1"]), "whh1": bf(params["whh1"]), "b1": params["b1"],
        "q_wT": bf(params["q_wT"]), "q_b": params["q_b"],
        "e_w": params["e_w"], "e_b": params["e_b"],
        "pred_b_pad": pred_b_pad,
    }

    logits_full, ids_full = greedy_decode(
        out_enc.astype(jnp.float32), emb_pad, key_s, feat_proj, params_k,
        T=max_seq_len, num_classes=num_classes, sos_tkn_idx=sos_tkn_idx)

    logits = jnp.transpose(logits_full[1:, :, :num_classes], (1, 0, 2))  # (N, T, C)
    ids = jnp.transpose(ids_full[:, :, 0], (1, 0))                       # (N, T+1)
    return logits, ids


# ----------------------------------------------------------------------------
# Parameter init (deterministic, shapes follow SARDecoder.__init__)
# ----------------------------------------------------------------------------
def init_params(key, num_classes, d_model, d_enc, d_k):
    hidden = d_enc  # encoder_rnn_out_size (enc_bi_rnn=False); dec_bi_rnn=False
    ks = jax.random.split(key, 17)

    def u(k, shape, fan):
        bound = 1.0 / np.sqrt(float(fan))
        return jax.random.uniform(k, shape, jnp.float32, -bound, bound)

    return {
        # nn.Embedding(num_classes, encoder_rnn_out_size)
        "emb": 0.1 * jax.random.normal(ks[0], (num_classes, d_enc), jnp.float32),
        # nn.Conv2d(d_model, d_k, 3, padding=1) (HWIO layout)
        "conv3_w": u(ks[1], (3, 3, d_model, d_k), 9 * d_model),
        "conv3_b": u(ks[2], (1, d_k), 9 * d_model),
        # nn.Linear(decoder_rnn_out_size, d_k) -- stored transposed (in, out)
        "q_wT": u(ks[3], (hidden, d_k), hidden),
        "q_b": u(ks[4], (1, d_k), hidden),
        # nn.Linear(d_k, 1) -- stored (1,1,d_k) so it broadcasts over (N, H*W, d_k)
        "e_w": u(ks[5], (1, 1, d_k), d_k),
        "e_b": u(ks[6], (1, 1), d_k),
        # nn.Linear(d_model, num_classes)  (pred_concat=False) -- stored transposed
        "pred_wT": u(ks[7], (d_model, num_classes), d_model),
        "pred_b": u(ks[8], (1, num_classes), d_model),
        # nn.LSTM(input=hidden, hidden=hidden, num_layers=2).
        # Stored transposed & gate-fused: (in, 4*hidden), PyTorch gate order (i,f,g,o);
        # bias = b_ih + b_hh.  One w_ih + one w_hh matmul per layer per step.
        "wih0": u(ks[9], (d_enc, 4 * hidden), hidden),
        "whh0": u(ks[10], (hidden, 4 * hidden), hidden),
        "b0": u(ks[11], (1, 4 * hidden), hidden) + u(ks[12], (1, 4 * hidden), hidden),
        "wih1": u(ks[13], (hidden, 4 * hidden), hidden),
        "whh1": u(ks[14], (hidden, 4 * hidden), hidden),
        "b1": u(ks[15], (1, 4 * hidden), hidden) + u(ks[16], (1, 4 * hidden), hidden),
    }


# ----------------------------------------------------------------------------
# Full greedy-decode forward (mirrors SARDecoder.forward with img_metas=None)
# ----------------------------------------------------------------------------
def sar_decoder_forward(params, feat_nchw, out_enc, *,
                        max_seq_len, sos_tkn_idx, eos_tkn_idx, pad_tkn_idx):
    logits_dev, ids_dev = _device_forward(
        params, feat_nchw, out_enc,
        max_seq_len=max_seq_len, sos_tkn_idx=sos_tkn_idx)

    # Single device->host sync for the whole decode.
    logits_np = np.asarray(logits_dev)      # (N, T, C)
    ids_np = np.asarray(ids_dev)            # (N, T+1); column 0 is SOS
    N, T, C = logits_np.shape

    # Reproduce the reference early-break: truncate at the first step where every
    # batch element has sampled EOS (later steps never affect earlier outputs).
    seen_eos = np.cumsum(ids_np[:, 1:] == eos_tkn_idx, axis=1) > 0       # (N, T)
    all_eos = seen_eos.all(axis=0)                                       # (T,)
    steps = int(np.argmax(all_eos)) + 1 if all_eos.any() else T

    logits = logits_np[:, :steps, :]                                     # (N, steps, C)
    ids = ids_np[:, :steps + 1].copy()                                   # (N, steps+1)

    # Pad everything after the first EOS with pad_tkn_idx (reference behaviour).
    eos_idxs = (ids == eos_tkn_idx).argmax(axis=1)
    for b in range(N):
        if eos_idxs[b] != 0:
            ids[b, int(eos_idxs[b]) + 1:] = pad_tkn_idx
    return jnp.asarray(logits), jnp.asarray(ids)


# ----------------------------------------------------------------------------
if __name__ == "__main__":
    key = jax.random.PRNGKey(0)
    kp, kf, ke = jax.random.split(key, 3)

    # small shapes consistent with the module
    N, d_model, H, W = 2, 32, 4, 8
    d_enc, d_k = 32, 16
    num_classes = 12
    max_seq_len = 6
    sos_tkn_idx, eos_tkn_idx, pad_tkn_idx = 10, 11, 0

    params = init_params(kp, num_classes, d_model, d_enc, d_k)
    feat = jax.random.normal(kf, (N, d_model, H, W), jnp.float32)   # NCHW like PyTorch
    out_enc = jax.random.normal(ke, (N, d_enc), jnp.float32)

    logits, sampled_ids = sar_decoder_forward(
        params, feat, out_enc,
        max_seq_len=max_seq_len,
        sos_tkn_idx=sos_tkn_idx,
        eos_tkn_idx=eos_tkn_idx,
        pad_tkn_idx=pad_tkn_idx)

    jax.block_until_ready(logits)
    jax.block_until_ready(sampled_ids)
    assert logits.ndim == 3 and logits.shape[0] == N and logits.shape[2] == num_classes
    assert sampled_ids.shape[0] == N and sampled_ids.shape[1] == logits.shape[1] + 1
    print("KERNEL_OK")
</pallas_src>

<mosaic_0001>
module attributes {stable_mosaic.version = 11 : i64} {
  func.func @_gemm_bias_kernel(%arg0: i32, %arg1: i32, %arg2: memref<64x288xbf16, #tpu.memory_space<vmem>>, %arg3: memref<288x16xbf16, #tpu.memory_space<vmem>>, %arg4: memref<1x16xf32, #tpu.memory_space<vmem>>, %arg5: memref<64x16xf32, #tpu.memory_space<vmem>>, %arg6: memref<64x16xf32, #tpu.memory_space<vmem>>) attributes {dimension_semantics = [#tpu.dimension_semantics<parallel>, #tpu.dimension_semantics<arbitrary>], iteration_bounds = array<i64: 1, 1>, scalar_prefetch = 0 : i64, scratch_operands = 1 : i64, tpu.core_type = #tpu.core_type<tc>, window_params = [{transform_indices = @transform_0, window_bounds = array<i64: 64, 288>}, {transform_indices = @transform_1, window_bounds = array<i64: 288, 16>}, {pipeline_mode = #tpu.pipeline_mode<synchronous>, transform_indices = @transform_2, window_bounds = array<i64: 1, 16>}, {transform_indices = @transform_3, window_bounds = array<i64: 64, 16>}]} {
    %c0_i32 = arith.constant 0 : i32
    %0 = arith.cmpi eq, %arg1, %c0_i32 : i32
    %1 = arith.extui %0 : i1 to i32
    %c0_i32_0 = arith.constant 0 : i32
    %2 = arith.cmpi ne, %1, %c0_i32_0 : i32
    scf.if %2 {
      %cst_10 = arith.constant 0.000000e+00 : f32
      %12 = vector.broadcast %cst_10 : f32 to vector<64x16xf32>
      %c0_11 = arith.constant 0 : index
      %c0_12 = arith.constant 0 : index
      %13 = vector.load %arg6[%c0_11, %c0_12] : memref<64x16xf32, #tpu.memory_space<vmem>>, vector<64x16xf32>
      tpu.vector_store %arg6[%c0_11, %c0_12], %12 {strides = array<i32>} : memref<64x16xf32, #tpu.memory_space<vmem>>, vector<64x16xf32>,
    } else {
    }
    %c0 = arith.constant 0 : index
    %c0_1 = arith.constant 0 : index
    %3 = vector.load %arg6[%c0, %c0_1] : memref<64x16xf32, #tpu.memory_space<vmem>>, vector<64x16xf32>
    %c0_2 = arith.constant 0 : index
    %c0_3 = arith.constant 0 : index
    %4 = vector.load %arg2[%c0_2, %c0_3] : memref<64x288xbf16, #tpu.memory_space<vmem>>, vector<64x288xbf16>
    %c0_4 = arith.constant 0 : index
    %c0_5 = arith.constant 0 : index
    %5 = vector.load %arg3[%c0_4, %c0_5] : memref<288x16xbf16, #tpu.memory_space<vmem>>, vector<288x16xbf16>
    %cst = arith.constant dense<0.000000e+00> : vector<64x16xf32>
    %6 = tpu.matmul %4, %5, %cst {dimension_numbers = #tpu.dot_dimension_numbers<[1], [0], [0], [1], [0, 0, 1, 1], [], []>} : vector<64x288xbf16>, vector<288x16xbf16>, vector<64x16xf32> -> vector<64x16xf32>
    %7 = arith.addf %3, %6 : vector<64x16xf32>
    %c0_6 = arith.constant 0 : index
    %c0_7 = arith.constant 0 : index
    %8 = vector.load %arg6[%c0_6, %c0_7] : memref<64x16xf32, #tpu.memory_space<vmem>>, vector<64x16xf32>
    tpu.vector_store %arg6[%c0_6, %c0_7], %7 {strides = array<i32>} : memref<64x16xf32, #tpu.memory_space<vmem>>, vector<64x16xf32>,
    %c0_i32_8 = arith.constant 0 : i32
    %9 = arith.cmpi eq, %arg1, %c0_i32_8 : i32
    %10 = arith.extui %9 : i1 to i32
    %c0_i32_9 = arith.constant 0 : i32
    %11 = arith.cmpi ne, %10, %c0_i32_9 : i32
    scf.if %11 {
      %c0_10 = arith.constant 0 : index
      %c0_11 = arith.constant 0 : index
      %12 = vector.load %arg6[%c0_10, %c0_11] : memref<64x16xf32, #tpu.memory_space<vmem>>, vector<64x16xf32>
      %c0_12 = arith.constant 0 : index
      %c0_13 = arith.constant 0 : index
      %13 = vector.load %arg4[%c0_12, %c0_13] : memref<1x16xf32, #tpu.memory_space<vmem>>, vector<1x16xf32>
      %14 = vector.broadcast %13 : vector<1x16xf32> to vector<64x16xf32>
      %15 = arith.addf %12, %14 : vector<64x16xf32>
      %c0_14 = arith.constant 0 : index
      %c0_15 = arith.constant 0 : index
      %16 = vector.load %arg5[%c0_14, %c0_15] : memref<64x16xf32, #tpu.memory_space<vmem>>, vector<64x16xf32>
      tpu.vector_store %arg5[%c0_14, %c0_15], %15 {strides = array<i32>} : memref<64x16xf32, #tpu.memory_space<vmem>>, vector<64x16xf32>,
    } else {
    }
    return
  }
  func.func @transform_0(%arg0: i32, %arg1: i32) -> (i32, i32) {
    %c0_i32 = arith.constant 0 : i32
    return %arg0, %arg1 : i32, i32
  }
  func.func @transform_1(%arg0: i32, %arg1: i32) -> (i32, i32) {
    %c0_i32 = arith.constant 0 : i32
    %c0_i32_0 = arith.constant 0 : i32
    return %arg1, %c0_i32 : i32, i32
  }
  func.func @transform_2(%arg0: i32, %arg1: i32) -> (i32, i32) {
    %c0_i32 = arith.constant 0 : i32
    %c0_i32_0 = arith.constant 0 : i32
    %c0_i32_1 = arith.constant 0 : i32
    return %c0_i32, %c0_i32_0 : i32, i32
  }
  func.func @transform_3(%arg0: i32, %arg1: i32) -> (i32, i32) {
    %c0_i32 = arith.constant 0 : i32
    %c0_i32_0 = arith.constant 0 : i32
    return %arg0, %c0_i32 : i32, i32
  }
}

module attributes {stable_mosaic.version = 11 : i64} {
  func.func @_gemm_bias_kernel(%arg0: i32, %arg1: i32, %arg2: memref<64x32xbf16, #tpu.memory_space<vmem>>, %arg3: memref<32x128xbf16, #tpu.memory_space<vmem>>, %arg4: memref<1x128xf32, #tpu.memory_space<vmem>>, %arg5: memref<64x128xf32, #tpu.memory_space<vmem>>, %arg6: memref<64x128xf32, #tpu.memory_space<vmem>>) attributes {dimension_semantics = [#tpu.dimension_semantics<parallel>, #tpu.dimension_semantics<arbitrary>], iteration_bounds = array<i64: 1, 1>, scalar_prefetch = 0 : i64, scratch_operands = 1 : i64, tpu.core_type = #tpu.core_type<tc>, window_params = [{transform_indices = @transform_0, window_bounds = array<i64: 64, 32>}, {transform_indices = @transform_1, window_bounds = array<i64: 32, 128>}, {pipeline_mode = #tpu.pipeline_mode<synchronous>, transform_indices = @transform_2, window_bounds = array<i64: 1, 128>}, {transform_indices = @transform_3, window_bounds = array<i64: 64, 128>}]} {
    %c0_i32 = arith.constant 0 : i32
    %0 = arith.cmpi eq, %arg1, %c0_i32 : i32
    %1 = arith.extui %0 : i1 to i32
    %c0_i32_0 = arith.constant 0 : i32
    %2 = arith.cmpi ne, %1, %c0_i32_0 : i32
    scf.if %2 {
      %cst_10 = arith.constant 0.000000e+00 : f32
      %12 = vector.broadcast %cst_10 : f32 to vector<64x128xf32>
      %c0_11 = arith.constant 0 : index
      %c0_12 = arith.constant 0 : index
      %13 = vector.load %arg6[%c0_11, %c0_12] : memref<64x128xf32, #tpu.memory_space<vmem>>, vector<64x128xf32>
      tpu.vector_store %arg6[%c0_11, %c0_12], %12 {strides = array<i32>} : memref<64x128xf32, #tpu.memory_space<vmem>>, vector<64x128xf32>,
    } else {
    }
    %c0 = arith.constant 0 : index
    %c0_1 = arith.constant 0 : index
    %3 = vector.load %arg6[%c0, %c0_1] : memref<64x128xf32, #tpu.memory_space<vmem>>, vector<64x128xf32>
    %c0_2 = arith.constant 0 : index
    %c0_3 = arith.constant 0 : index
    %4 = vector.load %arg2[%c0_2, %c0_3] : memref<64x32xbf16, #tpu.memory_space<vmem>>, vector<64x32xbf16>
    %c0_4 = arith.constant 0 : index
    %c0_5 = arith.constant 0 : index
    %5 = vector.load %arg3[%c0_4, %c0_5] : memref<32x128xbf16, #tpu.memory_space<vmem>>, vector<32x128xbf16>
    %cst = arith.constant dense<0.000000e+00> : vector<64x128xf32>
    %6 = tpu.matmul %4, %5, %cst {dimension_numbers = #tpu.dot_dimension_numbers<[1], [0], [0], [1], [0, 0, 1, 1], [], []>} : vector<64x32xbf16>, vector<32x128xbf16>, vector<64x128xf32> -> vector<64x128xf32>
    %7 = arith.addf %3, %6 : vector<64x128xf32>
    %c0_6 = arith.constant 0 : index
    %c0_7 = arith.constant 0 : index
    %8 = vector.load %arg6[%c0_6, %c0_7] : memref<64x128xf32, #tpu.memory_space<vmem>>, vector<64x128xf32>
    tpu.vector_store %arg6[%c0_6, %c0_7], %7 {strides = array<i32>} : memref<64x128xf32, #tpu.memory_space<vmem>>, vector<64x128xf32>,
    %c0_i32_8 = arith.constant 0 : i32
    %9 = arith.cmpi eq, %arg1, %c0_i32_8 : i32
    %10 = arith.extui %9 : i1 to i32
    %c0_i32_9 = arith.constant 0 : i32
    %11 = arith.cmpi ne, %10, %c0_i32_9 : i32
    scf.if %11 {
      %c0_10 = arith.constant 0 : index
      %c0_11 = arith.constant 0 : index
      %12 = vector.load %arg6[%c0_10, %c0_11] : memref<64x128xf32, #tpu.memory_space<vmem>>, vector<64x128xf32>
      %c0_12 = arith.constant 0 : index
      %c0_13 = arith.constant 0 : index
      %13 = vector.load %arg4[%c0_12, %c0_13] : memref<1x128xf32, #tpu.memory_space<vmem>>, vector<1x128xf32>
      %14 = vector.broadcast %13 : vector<1x128xf32> to vector<64x128xf32>
      %15 = arith.addf %12, %14 : vector<64x128xf32>
      %c0_14 = arith.constant 0 : index
      %c0_15 = arith.constant 0 : index
      %16 = vector.load %arg5[%c0_14, %c0_15] : memref<64x128xf32, #tpu.memory_space<vmem>>, vector<64x128xf32>
      tpu.vector_store %arg5[%c0_14, %c0_15], %15 {strides = array<i32>} : memref<64x128xf32, #tpu.memory_space<vmem>>, vector<64x128xf32>,
    } else {
    }
    return
  }
  func.func @transform_0(%arg0: i32, %arg1: i32) -> (i32, i32) {
    %c0_i32 = arith.constant 0 : i32
    return %arg0, %arg1 : i32, i32
  }
  func.func @transform_1(%arg0: i32, %arg1: i32) -> (i32, i32) {
    %c0_i32 = arith.constant 0 : i32
    %c0_i32_0 = arith.constant 0 : i32
    return %arg1, %c0_i32 : i32, i32
  }
  func.func @transform_2(%arg0: i32, %arg1: i32) -> (i32, i32) {
    %c0_i32 = arith.constant 0 : i32
    %c0_i32_0 = arith.constant 0 : i32
    %c0_i32_1 = arith.constant 0 : i32
    return %c0_i32, %c0_i32_0 : i32, i32
  }
  func.func @transform_3(%arg0: i32, %arg1: i32) -> (i32, i32) {
    %c0_i32 = arith.constant 0 : i32
    %c0_i32_0 = arith.constant 0 : i32
    return %arg0, %c0_i32 : i32, i32
  }
}

module attributes {stable_mosaic.version = 11 : i64} {
  func.func @_greedy_decode_kernel(%arg0: i32, %arg1: i32, %arg2: memref<2x32xf32, #tpu.memory_space<vmem>>, %arg3: memref<128x32xbf16, #tpu.memory_space<vmem>>, %arg4: memref<2x32x16xf32, #tpu.memory_space<vmem>>, %arg5: memref<2x32x128xbf16, #tpu.memory_space<vmem>>, %arg6: memref<32x128xbf16, #tpu.memory_space<vmem>>, %arg7: memref<32x128xbf16, #tpu.memory_space<vmem>>, %arg8: memref<1x128xf32, #tpu.memory_space<vmem>>, %arg9: memref<32x128xbf16, #tpu.memory_space<vmem>>, %arg10: memref<32x128xbf16, #tpu.memory_space<vmem>>, %arg11: memref<1x128xf32, #tpu.memory_space<vmem>>, %arg12: memref<32x16xbf16, #tpu.memory_space<vmem>>, %arg13: memref<1x16xf32, #tpu.memory_space<vmem>>, %arg14: memref<1x1x16xf32, #tpu.memory_space<vmem>>, %arg15: memref<1x1xf32, #tpu.memory_space<vmem>>, %arg16: memref<1x128xf32, #tpu.memory_space<vmem>>, %arg17: memref<1x2x128xf32, #tpu.memory_space<vmem>>, %arg18: memref<1x2x1xi32, #tpu.memory_space<vmem>>, %arg19: memref<2x32xf32, #tpu.memory_space<vmem>>, %arg20: memref<2x32xf32, #tpu.memory_space<vmem>>, %arg21: memref<2x32xf32, #tpu.memory_space<vmem>>, %arg22: memref<2x32xf32, #tpu.memory_space<vmem>>, %arg23: memref<2x32xf32, #tpu.memory_space<vmem>>, %arg24: memref<2x1xi32, #tpu.memory_space<vmem>>) attributes {dimension_semantics = [#tpu.dimension_semantics<parallel>, #tpu.dimension_semantics<arbitrary>], iteration_bounds = array<i64: 1, 7>, scalar_prefetch = 0 : i64, scratch_operands = 6 : i64, tpu.core_type = #tpu.core_type<tc>, window_params = [{pipeline_mode = #tpu.pipeline_mode<synchronous>, transform_indices = @transform_0, window_bounds = array<i64: 2, 32>}, {pipeline_mode = #tpu.pipeline_mode<synchronous>, transform_indices = @transform_1, window_bounds = array<i64: 128, 32>}, {pipeline_mode = #tpu.pipeline_mode<synchronous>, transform_indices = @transform_2, window_bounds = array<i64: 2, 32, 16>}, {pipeline_mode = #tpu.pipeline_mode<synchronous>, transform_indices = @transform_3, window_bounds = array<i64: 2, 32, 128>}, {pipeline_mode = #tpu.pipeline_mode<synchronous>, transform_indices = @transform_4, window_bounds = array<i64: 32, 128>}, {pipeline_mode = #tpu.pipeline_mode<synchronous>, transform_indices = @transform_5, window_bounds = array<i64: 32, 128>}, {pipeline_mode = #tpu.pipeline_mode<synchronous>, transform_indices = @transform_6, window_bounds = array<i64: 1, 128>}, {pipeline_mode = #tpu.pipeline_mode<synchronous>, transform_indices = @transform_7, window_bounds = array<i64: 32, 128>}, {pipeline_mode = #tpu.pipeline_mode<synchronous>, transform_indices = @transform_8, window_bounds = array<i64: 32, 128>}, {pipeline_mode = #tpu.pipeline_mode<synchronous>, transform_indices = @transform_9, window_bounds = array<i64: 1, 128>}, {pipeline_mode = #tpu.pipeline_mode<synchronous>, transform_indices = @transform_10, window_bounds = array<i64: 32, 16>}, {pipeline_mode = #tpu.pipeline_mode<synchronous>, transform_indices = @transform_11, window_bounds = array<i64: 1, 16>}, {pipeline_mode = #tpu.pipeline_mode<synchronous>, transform_indices = @transform_12, window_bounds = array<i64: 1, 1, 16>}, {pipeline_mode = #tpu.pipeline_mode<synchronous>, transform_indices = @transform_13, window_bounds = array<i64: 1, 1>}, {pipeline_mode = #tpu.pipeline_mode<synchronous>, transform_indices = @transform_14, window_bounds = array<i64: 1, 128>}, {transform_indices = @transform_15, window_bounds = array<i64: 1, 2, 128>}, {transform_indices = @transform_16, window_bounds = array<i64: 1, 2, 1>}]} {
    %0 = tpu.iota {dimensions = array<i32: 1>} : vector<2x128xi32>
    %c0_i32 = arith.constant 0 : i32
    %1 = arith.cmpi eq, %arg1, %c0_i32 : i32
    %2 = arith.extui %1 : i1 to i32
    %c0_i32_0 = arith.constant 0 : i32
    %3 = arith.cmpi ne, %2, %c0_i32_0 : i32
    scf.if %3 {
      %cst_79 = arith.constant 0.000000e+00 : f32
      %146 = vector.broadcast %cst_79 : f32 to vector<2x32xf32>
      %c0_80 = arith.constant 0 : index
      %c0_81 = arith.constant 0 : index
      %147 = vector.load %arg19[%c0_80, %c0_81] : memref<2x32xf32, #tpu.memory_space<vmem>>, vector<2x32xf32>
      tpu.vector_store %arg19[%c0_80, %c0_81], %146 {strides = array<i32>} : memref<2x32xf32, #tpu.memory_space<vmem>>, vector<2x32xf32>,
      %cst_82 = arith.constant 0.000000e+00 : f32
      %148 = vector.broadcast %cst_82 : f32 to vector<2x32xf32>
      %c0_83 = arith.constant 0 : index
      %c0_84 = arith.constant 0 : index
      %149 = vector.load %arg20[%c0_83, %c0_84] : memref<2x32xf32, #tpu.memory_space<vmem>>, vector<2x32xf32>
      tpu.vector_store %arg20[%c0_83, %c0_84], %148 {strides = array<i32>} : memref<2x32xf32, #tpu.memory_space<vmem>>, vector<2x32xf32>,
      %cst_85 = arith.constant 0.000000e+00 : f32
      %150 = vector.broadcast %cst_85 : f32 to vector<2x32xf32>
      %c0_86 = arith.constant 0 : index
      %c0_87 = arith.constant 0 : index
      %151 = vector.load %arg21[%c0_86, %c0_87] : memref<2x32xf32, #tpu.memory_space<vmem>>, vector<2x32xf32>
      tpu.vector_store %arg21[%c0_86, %c0_87], %150 {strides = array<i32>} : memref<2x32xf32, #tpu.memory_space<vmem>>, vector<2x32xf32>,
      %cst_88 = arith.constant 0.000000e+00 : f32
      %152 = vector.broadcast %cst_88 : f32 to vector<2x32xf32>
      %c0_89 = arith.constant 0 : index
      %c0_90 = arith.constant 0 : index
      %153 = vector.load %arg22[%c0_89, %c0_90] : memref<2x32xf32, #tpu.memory_space<vmem>>, vector<2x32xf32>
      tpu.vector_store %arg22[%c0_89, %c0_90], %152 {strides = array<i32>} : memref<2x32xf32, #tpu.memory_space<vmem>>, vector<2x32xf32>,
      %c10_i32 = arith.constant 10 : i32
      %154 = vector.broadcast %c10_i32 : i32 to vector<2x1xi32>
      %c0_91 = arith.constant 0 : index
      %c0_92 = arith.constant 0 : index
      %155 = vector.load %arg24[%c0_91, %c0_92] : memref<2x1xi32, #tpu.memory_space<vmem>>, vector<2x1xi32>
      tpu.vector_store %arg24[%c0_91, %c0_92], %154 {strides = array<i32>} : memref<2x1xi32, #tpu.memory_space<vmem>>, vector<2x1xi32>,
      %c0_93 = arith.constant 0 : index
      %c0_94 = arith.constant 0 : index
      %156 = vector.load %arg2[%c0_93, %c0_94] : memref<2x32xf32, #tpu.memory_space<vmem>>, vector<2x32xf32>
      %c0_95 = arith.constant 0 : index
      %c0_96 = arith.constant 0 : index
      %157 = vector.load %arg23[%c0_95, %c0_96] : memref<2x32xf32, #tpu.memory_space<vmem>>, vector<2x32xf32>
      tpu.vector_store %arg23[%c0_95, %c0_96], %156 {strides = array<i32>} : memref<2x32xf32, #tpu.memory_space<vmem>>, vector<2x32xf32>,
    } else {
    }
    %c0_i32_1 = arith.constant 0 : i32
    %4 = arith.cmpi ne, %arg1, %c0_i32_1 : i32
    %5 = arith.extui %4 : i1 to i32
    %c0_i32_2 = arith.constant 0 : i32
    %6 = arith.cmpi ne, %5, %c0_i32_2 : i32
    scf.if %6 {
      %c0_79 = arith.constant 0 : index
      %c0_80 = arith.constant 0 : index
      %146 = vector.load %arg24[%c0_79, %c0_80] : memref<2x1xi32, #tpu.memory_space<vmem>>, vector<2x1xi32>
      %147 = vector.broadcast %146 : vector<2x1xi32> to vector<2x128xi32>
      %148 = arith.cmpi eq, %147, %0 : vector<2x128xi32>
      %149 = arith.extui %148 : vector<2x128xi1> to vector<2x128xi32>
      %150 = arith.sitofp %149 : vector<2x128xi32> to vector<2x128xf32>
      %151 = arith.truncf %150 : vector<2x128xf32> to vector<2x128xbf16>
      %c0_81 = arith.constant 0 : index
      %c0_82 = arith.constant 0 : index
      %152 = vector.load %arg3[%c0_81, %c0_82] : memref<128x32xbf16, #tpu.memory_space<vmem>>, vector<128x32xbf16>
      %cst_83 = arith.constant dense<0.000000e+00> : vector<2x32xf32>
      %153 = tpu.matmul %151, %152, %cst_83 {dimension_numbers = #tpu.dot_dimension_numbers<[1], [0], [0], [1], [0, 0, 1, 1], [], []>} : vector<2x128xbf16>, vector<128x32xbf16>, vector<2x32xf32> -> vector<2x32xf32>
      %c0_84 = arith.constant 0 : index
      %c0_85 = arith.constant 0 : index
      %154 = vector.load %arg23[%c0_84, %c0_85] : memref<2x32xf32, #tpu.memory_space<vmem>>, vector<2x32xf32>
      tpu.vector_store %arg23[%c0_84, %c0_85], %153 {strides = array<i32>} : memref<2x32xf32, #tpu.memory_space<vmem>>, vector<2x32xf32>,
    } else {
    }
    %c0 = arith.constant 0 : index
    %c0_3 = arith.constant 0 : index
    %7 = vector.load %arg23[%c0, %c0_3] : memref<2x32xf32, #tpu.memory_space<vmem>>, vector<2x32xf32>
    %c0_4 = arith.constant 0 : index
    %c0_5 = arith.constant 0 : index
    %8 = vector.load %arg19[%c0_4, %c0_5] : memref<2x32xf32, #tpu.memory_space<vmem>>, vector<2x32xf32>
    %c0_6 = arith.constant 0 : index
    %c0_7 = arith.constant 0 : index
    %9 = vector.load %arg20[%c0_6, %c0_7] : memref<2x32xf32, #tpu.memory_space<vmem>>, vector<2x32xf32>
    %10 = arith.truncf %7 : vector<2x32xf32> to vector<2x32xbf16>
    %c0_8 = arith.constant 0 : index
    %c0_9 = arith.constant 0 : index
    %11 = vector.load %arg6[%c0_8, %c0_9] : memref<32x128xbf16, #tpu.memory_space<vmem>>, vector<32x128xbf16>
    %cst = arith.constant dense<0.000000e+00> : vector<2x128xf32>
    %12 = tpu.matmul %10, %11, %cst {dimension_numbers = #tpu.dot_dimension_numbers<[1], [0], [0], [1], [0, 0, 1, 1], [], []>} : vector<2x32xbf16>, vector<32x128xbf16>, vector<2x128xf32> -> vector<2x128xf32>
    %13 = arith.truncf %8 : vector<2x32xf32> to vector<2x32xbf16>
    %c0_10 = arith.constant 0 : index
    %c0_11 = arith.constant 0 : index
    %14 = vector.load %arg7[%c0_10, %c0_11] : memref<32x128xbf16, #tpu.memory_space<vmem>>, vector<32x128xbf16>
    %cst_12 = arith.constant dense<0.000000e+00> : vector<2x128xf32>
    %15 = tpu.matmul %13, %14, %cst_12 {dimension_numbers = #tpu.dot_dimension_numbers<[1], [0], [0], [1], [0, 0, 1, 1], [], []>} : vector<2x32xbf16>, vector<32x128xbf16>, vector<2x128xf32> -> vector<2x128xf32>
    %16 = arith.addf %12, %15 : vector<2x128xf32>
    %c0_13 = arith.constant 0 : index
    %c0_14 = arith.constant 0 : index
    %17 = vector.load %arg8[%c0_13, %c0_14] : memref<1x128xf32, #tpu.memory_space<vmem>>, vector<1x128xf32>
    %18 = vector.broadcast %17 : vector<1x128xf32> to vector<2x128xf32>
    %19 = arith.addf %16, %18 : vector<2x128xf32>
    %20 = vector.extract_strided_slice %19 {offsets = [0, 0], sizes = [2, 32], strides = [1, 1]} : vector<2x128xf32> to vector<2x32xf32>
    %21 = arith.negf %20 : vector<2x32xf32>
    %22 = math.exp %21 : vector<2x32xf32>
    %cst_15 = arith.constant 1.000000e+00 : f32
    %23 = vector.broadcast %cst_15 : f32 to vector<2x32xf32>
    %24 = arith.addf %23, %22 : vector<2x32xf32>
    %25 = arith.divf %23, %24 : vector<2x32xf32>
    %26 = vector.extract_strided_slice %19 {offsets = [0, 32], sizes = [2, 32], strides = [1, 1]} : vector<2x128xf32> to vector<2x32xf32>
    %27 = arith.negf %26 : vector<2x32xf32>
    %28 = math.exp %27 : vector<2x32xf32>
    %cst_16 = arith.constant 1.000000e+00 : f32
    %29 = vector.broadcast %cst_16 : f32 to vector<2x32xf32>
    %30 = arith.addf %29, %28 : vector<2x32xf32>
    %31 = arith.divf %29, %30 : vector<2x32xf32>
    %32 = vector.extract_strided_slice %19 {offsets = [0, 64], sizes = [2, 32], strides = [1, 1]} : vector<2x128xf32> to vector<2x32xf32>
    %33 = math.tanh %32 : vector<2x32xf32>
    %34 = vector.extract_strided_slice %19 {offsets = [0, 96], sizes = [2, 32], strides = [1, 1]} : vector<2x128xf32> to vector<2x32xf32>
    %35 = arith.negf %34 : vector<2x32xf32>
    %36 = math.exp %35 : vector<2x32xf32>
    %cst_17 = arith.constant 1.000000e+00 : f32
    %37 = vector.broadcast %cst_17 : f32 to vector<2x32xf32>
    %38 = arith.addf %37, %36 : vector<2x32xf32>
    %39 = arith.divf %37, %38 : vector<2x32xf32>
    %40 = arith.mulf %31, %9 : vector<2x32xf32>
    %41 = arith.mulf %25, %33 : vector<2x32xf32>
    %42 = arith.addf %40, %41 : vector<2x32xf32>
    %43 = math.tanh %42 : vector<2x32xf32>
    %44 = arith.mulf %39, %43 : vector<2x32xf32>
    %c0_18 = arith.constant 0 : index
    %c0_19 = arith.constant 0 : index
    %45 = vector.load %arg21[%c0_18, %c0_19] : memref<2x32xf32, #tpu.memory_space<vmem>>, vector<2x32xf32>
    %c0_20 = arith.constant 0 : index
    %c0_21 = arith.constant 0 : index
    %46 = vector.load %arg22[%c0_20, %c0_21] : memref<2x32xf32, #tpu.memory_space<vmem>>, vector<2x32xf32>
    %47 = arith.truncf %44 : vector<2x32xf32> to vector<2x32xbf16>
    %c0_22 = arith.constant 0 : index
    %c0_23 = arith.constant 0 : index
    %48 = vector.load %arg9[%c0_22, %c0_23] : memref<32x128xbf16, #tpu.memory_space<vmem>>, vector<32x128xbf16>
    %cst_24 = arith.constant dense<0.000000e+00> : vector<2x128xf32>
    %49 = tpu.matmul %47, %48, %cst_24 {dimension_numbers = #tpu.dot_dimension_numbers<[1], [0], [0], [1], [0, 0, 1, 1], [], []>} : vector<2x32xbf16>, vector<32x128xbf16>, vector<2x128xf32> -> vector<2x128xf32>
    %50 = arith.truncf %45 : vector<2x32xf32> to vector<2x32xbf16>
    %c0_25 = arith.constant 0 : index
    %c0_26 = arith.constant 0 : index
    %51 = vector.load %arg10[%c0_25, %c0_26] : memref<32x128xbf16, #tpu.memory_space<vmem>>, vector<32x128xbf16>
    %cst_27 = arith.constant dense<0.000000e+00> : vector<2x128xf32>
    %52 = tpu.matmul %50, %51, %cst_27 {dimension_numbers = #tpu.dot_dimension_numbers<[1], [0], [0], [1], [0, 0, 1, 1], [], []>} : vector<2x32xbf16>, vector<32x128xbf16>, vector<2x128xf32> -> vector<2x128xf32>
    %53 = arith.addf %49, %52 : vector<2x128xf32>
    %c0_28 = arith.constant 0 : index
    %c0_29 = arith.constant 0 : index
    %54 = vector.load %arg11[%c0_28, %c0_29] : memref<1x128xf32, #tpu.memory_space<vmem>>, vector<1x128xf32>
    %55 = vector.broadcast %54 : vector<1x128xf32> to vector<2x128xf32>
    %56 = arith.addf %53, %55 : vector<2x128xf32>
    %57 = vector.extract_strided_slice %56 {offsets = [0, 0], sizes = [2, 32], strides = [1, 1]} : vector<2x128xf32> to vector<2x32xf32>
    %58 = arith.negf %57 : vector<2x32xf32>
    %59 = math.exp %58 : vector<2x32xf32>
    %cst_30 = arith.constant 1.000000e+00 : f32
    %60 = vector.broadcast %cst_30 : f32 to vector<2x32xf32>
    %61 = arith.addf %60, %59 : vector<2x32xf32>
    %62 = arith.divf %60, %61 : vector<2x32xf32>
    %63 = vector.extract_strided_slice %56 {offsets = [0, 32], sizes = [2, 32], strides = [1, 1]} : vector<2x128xf32> to vector<2x32xf32>
    %64 = arith.negf %63 : vector<2x32xf32>
    %65 = math.exp %64 : vector<2x32xf32>
    %cst_31 = arith.constant 1.000000e+00 : f32
    %66 = vector.broadcast %cst_31 : f32 to vector<2x32xf32>
    %67 = arith.addf %66, %65 : vector<2x32xf32>
    %68 = arith.divf %66, %67 : vector<2x32xf32>
    %69 = vector.extract_strided_slice %56 {offsets = [0, 64], sizes = [2, 32], strides = [1, 1]} : vector<2x128xf32> to vector<2x32xf32>
    %70 = math.tanh %69 : vector<2x32xf32>
    %71 = vector.extract_strided_slice %56 {offsets = [0, 96], sizes = [2, 32], strides = [1, 1]} : vector<2x128xf32> to vector<2x32xf32>
    %72 = arith.negf %71 : vector<2x32xf32>
    %73 = math.exp %72 : vector<2x32xf32>
    %cst_32 = arith.constant 1.000000e+00 : f32
    %74 = vector.broadcast %cst_32 : f32 to vector<2x32xf32>
    %75 = arith.addf %74, %73 : vector<2x32xf32>
    %76 = arith.divf %74, %75 : vector<2x32xf32>
    %77 = arith.mulf %68, %46 : vector<2x32xf32>
    %78 = arith.mulf %62, %70 : vector<2x32xf32>
    %79 = arith.addf %77, %78 : vector<2x32xf32>
    %80 = math.tanh %79 : vector<2x32xf32>
    %81 = arith.mulf %76, %80 : vector<2x32xf32>
    %c0_33 = arith.constant 0 : index
    %c0_34 = arith.constant 0 : index
    %82 = vector.load %arg19[%c0_33, %c0_34] : memref<2x32xf32, #tpu.memory_space<vmem>>, vector<2x32xf32>
    tpu.vector_store %arg19[%c0_33, %c0_34], %44 {strides = array<i32>} : memref<2x32xf32, #tpu.memory_space<vmem>>, vector<2x32xf32>,
    %c0_35 = arith.constant 0 : index
    %c0_36 = arith.constant 0 : index
    %83 = vector.load %arg20[%c0_35, %c0_36] : memref<2x32xf32, #tpu.memory_space<vmem>>, vector<2x32xf32>
    tpu.vector_store %arg20[%c0_35, %c0_36], %42 {strides = array<i32>} : memref<2x32xf32, #tpu.memory_space<vmem>>, vector<2x32xf32>,
    %c0_37 = arith.constant 0 : index
    %c0_38 = arith.constant 0 : index
    %84 = vector.load %arg21[%c0_37, %c0_38] : memref<2x32xf32, #tpu.memory_space<vmem>>, vector<2x32xf32>
    tpu.vector_store %arg21[%c0_37, %c0_38], %81 {strides = array<i32>} : memref<2x32xf32, #tpu.memory_space<vmem>>, vector<2x32xf32>,
    %c0_39 = arith.constant 0 : index
    %c0_40 = arith.constant 0 : index
    %85 = vector.load %arg22[%c0_39, %c0_40] : memref<2x32xf32, #tpu.memory_space<vmem>>, vector<2x32xf32>
    tpu.vector_store %arg22[%c0_39, %c0_40], %79 {strides = array<i32>} : memref<2x32xf32, #tpu.memory_space<vmem>>, vector<2x32xf32>,
    %86 = arith.truncf %81 : vector<2x32xf32> to vector<2x32xbf16>
    %c0_41 = arith.constant 0 : index
    %c0_42 = arith.constant 0 : index
    %87 = vector.load %arg12[%c0_41, %c0_42] : memref<32x16xbf16, #tpu.memory_space<vmem>>, vector<32x16xbf16>
    %cst_43 = arith.constant dense<0.000000e+00> : vector<2x16xf32>
    %88 = tpu.matmul %86, %87, %cst_43 {dimension_numbers = #tpu.dot_dimension_numbers<[1], [0], [0], [1], [0, 0, 1, 1], [], []>} : vector<2x32xbf16>, vector<32x16xbf16>, vector<2x16xf32> -> vector<2x16xf32>
    %c0_44 = arith.constant 0 : index
    %c0_45 = arith.constant 0 : index
    %89 = vector.load %arg13[%c0_44, %c0_45] : memref<1x16xf32, #tpu.memory_space<vmem>>, vector<1x16xf32>
    %90 = vector.broadcast %89 : vector<1x16xf32> to vector<2x16xf32>
    %91 = arith.addf %88, %90 : vector<2x16xf32>
    %c0_46 = arith.constant 0 : index
    %c0_47 = arith.constant 0 : index
    %c0_48 = arith.constant 0 : index
    %92 = vector.load %arg4[%c0_46, %c0_47, %c0_48] : memref<2x32x16xf32, #tpu.memory_space<vmem>>, vector<2x32x16xf32>
    %93 = vector.shape_cast %91 : vector<2x16xf32> to vector<2x1x16xf32>
    %94 = vector.broadcast %93 : vector<2x1x16xf32> to vector<2x32x16xf32>
    %95 = arith.addf %92, %94 : vector<2x32x16xf32>
    %96 = math.tanh %95 : vector<2x32x16xf32>
    %c0_49 = arith.constant 0 : index
    %c0_50 = arith.constant 0 : index
    %c0_51 = arith.constant 0 : index
    %97 = vector.load %arg14[%c0_49, %c0_50, %c0_51] : memref<1x1x16xf32, #tpu.memory_space<vmem>>, vector<1x1x16xf32>
    %98 = vector.broadcast %97 : vector<1x1x16xf32> to vector<2x32x16xf32>
    %99 = arith.mulf %96, %98 : vector<2x32x16xf32>
    %cst_52 = arith.constant dense<0.000000e+00> : vector<2x32xf32>
    %100 = vector.multi_reduction <add>, %99, %cst_52 [2] : vector<2x32x16xf32> to vector<2x32xf32>
    %c0_53 = arith.constant 0 : index
    %c0_54 = arith.constant 0 : index
    %101 = vector.load %arg15[%c0_53, %c0_54] : memref<1x1xf32, #tpu.memory_space<vmem>>, vector<1x1xf32>
    %102 = vector.broadcast %101 : vector<1x1xf32> to vector<2x32xf32>
    %103 = arith.addf %100, %102 : vector<2x32xf32>
    %cst_55 = arith.constant dense<0xFF800000> : vector<2xf32>
    %104 = vector.multi_reduction <maximumf>, %103, %cst_55 [1] : vector<2x32xf32> to vector<2xf32>
    %105 = vector.shape_cast %104 : vector<2xf32> to vector<2x1xf32>
    %106 = vector.broadcast %105 : vector<2x1xf32> to vector<2x32xf32>
    %107 = arith.subf %103, %106 : vector<2x32xf32>
    %108 = math.exp %107 : vector<2x32xf32>
    %cst_56 = arith.constant dense<0.000000e+00> : vector<2xf32>
    %109 = vector.multi_reduction <add>, %108, %cst_56 [1] : vector<2x32xf32> to vector<2xf32>
    %110 = vector.shape_cast %109 : vector<2xf32> to vector<2x1xf32>
    %111 = vector.broadcast %110 : vector<2x1xf32> to vector<2x32xf32>
    %112 = arith.divf %108, %111 : vector<2x32xf32>
    %113 = vector.shape_cast %112 : vector<2x32xf32> to vector<2x1x32xf32>
    %114 = arith.truncf %113 : vector<2x1x32xf32> to vector<2x1x32xbf16>
    %c0_57 = arith.constant 0 : index
    %c0_58 = arith.constant 0 : index
    %c0_59 = arith.constant 0 : index
    %115 = vector.load %arg5[%c0_57, %c0_58, %c0_59] : memref<2x32x128xbf16, #tpu.memory_space<vmem>>, vector<2x32x128xbf16>
    "tpu.trace_start"() <{level = 10 : i32, message = "nqs,nsc->nqc"}> : () -> ()
    %cst_60 = arith.constant dense<0.000000e+00> : vector<2x1x128xf32>
    %116 = tpu.matmul %114, %115, %cst_60 {dimension_numbers = #tpu.dot_dimension_numbers<[2], [1], [1], [2], [0, 0, 0, 1, 1, 2], [0], [0]>} : vector<2x1x32xbf16>, vector<2x32x128xbf16>, vector<2x1x128xf32> -> vector<2x1x128xf32>
    "tpu.trace_stop"() : () -> ()
    %117 = vector.shape_cast %116 : vector<2x1x128xf32> to vector<2x128xf32>
    %c0_61 = arith.constant 0 : index
    %c0_62 = arith.constant 0 : index
    %118 = vector.load %arg16[%c0_61, %c0_62] : memref<1x128xf32, #tpu.memory_space<vmem>>, vector<1x128xf32>
    %119 = vector.broadcast %118 : vector<1x128xf32> to vector<2x128xf32>
    %120 = arith.addf %117, %119 : vector<2x128xf32>
    %c0_63 = arith.constant 0 : index
    %c0_64 = arith.constant 0 : index
    %c0_65 = arith.constant 0 : index
    %121 = vector.load %arg17[%c0_63, %c0_64, %c0_65] : memref<1x2x128xf32, #tpu.memory_space<vmem>>, vector<1x2x128xf32>
    %122 = vector.shape_cast %121 : vector<1x2x128xf32> to vector<2x128xf32>
    %123 = vector.shape_cast %120 : vector<2x128xf32> to vector<1x2x128xf32>
    tpu.vector_store %arg17[%c0_63, %c0_64, %c0_65], %123 {strides = array<i32>} : memref<1x2x128xf32, #tpu.memory_space<vmem>>, vector<1x2x128xf32>,
    %c12_i32 = arith.constant 12 : i32
    %124 = vector.broadcast %c12_i32 : i32 to vector<2x128xi32>
    %125 = arith.cmpi slt, %0, %124 : vector<2x128xi32>
    %cst_66 = arith.constant 0xFF800000 : f32
    %126 = vector.broadcast %cst_66 : f32 to vector<2x128xf32>
    %127 = arith.select %125, %120, %126 : vector<2x128xi1>, vector<2x128xf32>
    %cst_67 = arith.constant dense<0xFF800000> : vector<2xf32>
    %128 = vector.multi_reduction <maximumf>, %127, %cst_67 [1] : vector<2x128xf32> to vector<2xf32>
    %129 = vector.shape_cast %128 : vector<2xf32> to vector<2x1xf32>
    %130 = vector.broadcast %129 : vector<2x1xf32> to vector<2x128xf32>
    %131 = arith.cmpf oeq, %127, %130 : vector<2x128xf32>
    %132 = arith.sitofp %0 : vector<2x128xi32> to vector<2x128xf32>
    %cst_68 = arith.constant 1.280000e+02 : f32
    %133 = vector.broadcast %cst_68 : f32 to vector<2x128xf32>
    %134 = arith.select %131, %132, %133 : vector<2x128xi1>, vector<2x128xf32>
    %cst_69 = arith.constant dense<0x7F800000> : vector<2xf32>
    %135 = vector.multi_reduction <minimumf>, %134, %cst_69 [1] : vector<2x128xf32> to vector<2xf32>
    %136 = vector.shape_cast %135 : vector<2xf32> to vector<2x1xf32>
    %137 = arith.fptosi %136 : vector<2x1xf32> to vector<2x1xi32>
    %c0_70 = arith.constant 0 : index
    %c0_71 = arith.constant 0 : index
    %138 = vector.load %arg24[%c0_70, %c0_71] : memref<2x1xi32, #tpu.memory_space<vmem>>, vector<2x1xi32>
    tpu.vector_store %arg24[%c0_70, %c0_71], %137 {strides = array<i32>} : memref<2x1xi32, #tpu.memory_space<vmem>>, vector<2x1xi32>,
    %c0_i32_72 = arith.constant 0 : i32
    %139 = arith.cmpi eq, %arg1, %c0_i32_72 : i32
    %140 = arith.extui %139 : i1 to i32
    %c0_i32_73 = arith.constant 0 : i32
    %141 = arith.cmpi ne, %140, %c0_i32_73 : i32
    scf.if %141 {
      %c10_i32 = arith.constant 10 : i32
      %146 = vector.broadcast %c10_i32 : i32 to vector<2x1xi32>
      %c0_79 = arith.constant 0 : index
      %c0_80 = arith.constant 0 : index
      %147 = vector.load %arg24[%c0_79, %c0_80] : memref<2x1xi32, #tpu.memory_space<vmem>>, vector<2x1xi32>
      tpu.vector_store %arg24[%c0_79, %c0_80], %146 {strides = array<i32>} : memref<2x1xi32, #tpu.memory_space<vmem>>, vector<2x1xi32>,
    } else {
    }
    %c0_74 = arith.constant 0 : index
    %c0_75 = arith.constant 0 : index
    %142 = vector.load %arg24[%c0_74, %c0_75] : memref<2x1xi32, #tpu.memory_space<vmem>>, vector<2x1xi32>
    %c0_76 = arith.constant 0 : index
    %c0_77 = arith.constant 0 : index
    %c0_78 = arith.constant 0 : index
    %143 = vector.load %arg18[%c0_76, %c0_77, %c0_78] : memref<1x2x1xi32, #tpu.memory_space<vmem>>, vector<1x2x1xi32>
    %144 = vector.shape_cast %143 : vector<1x2x1xi32> to vector<2x1xi32>
    %145 = vector.shape_cast %142 : vector<2x1xi32> to vector<1x2x1xi32>
    tpu.vector_store %arg18[%c0_76, %c0_77, %c0_78], %145 {strides = array<i32>} : memref<1x2x1xi32, #tpu.memory_space<vmem>>, vector<1x2x1xi32>,
    return
  }
  func.func @transform_0(%arg0: i32, %arg1: i32) -> (i32, i32) {
    %c0_i32 = arith.constant 0 : i32
    %c0_i32_0 = arith.constant 0 : i32
    return %arg0, %c0_i32 : i32, i32
  }
  func.func @transform_1(%arg0: i32, %arg1: i32) -> (i32, i32) {
    %c0_i32 = arith.constant 0 : i32
    %c0_i32_0 = arith.constant 0 : i32
    %c0_i32_1 = arith.constant 0 : i32
    return %c0_i32, %c0_i32_0 : i32, i32
  }
  func.func @transform_2(%arg0: i32, %arg1: i32) -> (i32, i32, i32) {
    %c0_i32 = arith.constant 0 : i32
    %c0_i32_0 = arith.constant 0 : i32
    %c0_i32_1 = arith.constant 0 : i32
    return %arg0, %c0_i32, %c0_i32_0 : i32, i32, i32
  }
  func.func @transform_3(%arg0: i32, %arg1: i32) -> (i32, i32, i32) {
    %c0_i32 = arith.constant 0 : i32
    %c0_i32_0 = arith.constant 0 : i32
    %c0_i32_1 = arith.constant 0 : i32
    return %arg0, %c0_i32, %c0_i32_0 : i32, i32, i32
  }
  func.func @transform_4(%arg0: i32, %arg1: i32) -> (i32, i32) {
    %c0_i32 = arith.constant 0 : i32
    %c0_i32_0 = arith.constant 0 : i32
    %c0_i32_1 = arith.constant 0 : i32
    return %c0_i32, %c0_i32_0 : i32, i32
  }
  func.func @transform_5(%arg0: i32, %arg1: i32) -> (i32, i32) {
    %c0_i32 = arith.constant 0 : i32
    %c0_i32_0 = arith.constant 0 : i32
    %c0_i32_1 = arith.constant 0 : i32
    return %c0_i32, %c0_i32_0 : i32, i32
  }
  func.func @transform_6(%arg0: i32, %arg1: i32) -> (i32, i32) {
    %c0_i32 = arith.constant 0 : i32
    %c0_i32_0 = arith.constant 0 : i32
    %c0_i32_1 = arith.constant 0 : i32
    return %c0_i32, %c0_i32_0 : i32, i32
  }
  func.func @transform_7(%arg0: i32, %arg1: i32) -> (i32, i32) {
    %c0_i32 = arith.constant 0 : i32
    %c0_i32_0 = arith.constant 0 : i32
    %c0_i32_1 = arith.constant 0 : i32
    return %c0_i32, %c0_i32_0 : i32, i32
  }
  func.func @transform_8(%arg0: i32, %arg1: i32) -> (i32, i32) {
    %c0_i32 = arith.constant 0 : i32
    %c0_i32_0 = arith.constant 0 : i32
    %c0_i32_1 = arith.constant 0 : i32
    return %c0_i32, %c0_i32_0 : i32, i32
  }
  func.func @transform_9(%arg0: i32, %arg1: i32) -> (i32, i32) {
    %c0_i32 = arith.constant 0 : i32
    %c0_i32_0 = arith.constant 0 : i32
    %c0_i32_1 = arith.constant 0 : i32
    return %c0_i32, %c0_i32_0 : i32, i32
  }
  func.func @transform_10(%arg0: i32, %arg1: i32) -> (i32, i32) {
    %c0_i32 = arith.constant 0 : i32
    %c0_i32_0 = arith.constant 0 : i32
    %c0_i32_1 = arith.constant 0 : i32
    return %c0_i32, %c0_i32_0 : i32, i32
  }
  func.func @transform_11(%arg0: i32, %arg1: i32) -> (i32, i32) {
    %c0_i32 = arith.constant 0 : i32
    %c0_i32_0 = arith.constant 0 : i32
    %c0_i32_1 = arith.constant 0 : i32
    return %c0_i32, %c0_i32_0 : i32, i32
  }
  func.func @transform_12(%arg0: i32, %arg1: i32) -> (i32, i32, i32) {
    %c0_i32 = arith.constant 0 : i32
    %c0_i32_0 = arith.constant 0 : i32
    %c0_i32_1 = arith.constant 0 : i32
    %c0_i32_2 = arith.constant 0 : i32
    return %c0_i32, %c0_i32_0, %c0_i32_1 : i32, i32, i32
  }
  func.func @transform_13(%arg0: i32, %arg1: i32) -> (i32, i32) {
    %c0_i32 = arith.constant 0 : i32
    %c0_i32_0 = arith.constant 0 : i32
    %c0_i32_1 = arith.constant 0 : i32
    return %c0_i32, %c0_i32_0 : i32, i32
  }
  func.func @transform_14(%arg0: i32, %arg1: i32) -> (i32, i32) {
    %c0_i32 = arith.constant 0 : i32
    %c0_i32_0 = arith.constant 0 : i32
    %c0_i32_1 = arith.constant 0 : i32
    return %c0_i32, %c0_i32_0 : i32, i32
  }
  func.func @transform_15(%arg0: i32, %arg1: i32) -> (i32, i32, i32) {
    %c0_i32 = arith.constant 0 : i32
    %c0_i32_0 = arith.constant 0 : i32
    return %arg1, %arg0, %c0_i32 : i32, i32, i32
  }
  func.func @transform_16(%arg0: i32, %arg1: i32) -> (i32, i32, i32) {
    %c0_i32 = arith.constant 0 : i32
    %c0_i32_0 = arith.constant 0 : i32
    return %arg1, %arg0, %c0_i32 : i32, i32, i32
  }
}

</mosaic_0001>

<bundles_post_ra>
// kernel: _device_forward.4
= control target key start
LH: loop header
LB: loop body
LE: loop exit
PB: predicated region body
PF: predicated region fallthrough
CT: control target
= control target key end

     0   :  { %vm79_vm0 = vcmask 261120   ;;  %s315_s1 = inlined_call_operand.vmem [shape: bf16[32,128], index: 1, kind: input, shape index: {}]   ;;  %s316_s0 = inlined_call_operand.vmem [shape: bf16[64,32], index: 0, kind: input, shape index: {}]   ;;  %s317_s2 = inlined_call_operand.vmem [shape: f32[1,128], index: 2, kind: input, shape index: {}]   ;;  %s318_s3 = inlined_call_operand.vmem [shape: f32[64,128], index: 3, kind: output, shape index: {}]  }
   0x1   :  { %v244_v0 = vld [vmem:[%s315_s1] sm:$0xff]   ;;  %v245_v1 = vld [vmem:[%s315_s1 + $0x8] sm:$0xff]   ;;  %v247_v3 = vld [vmem:[%s316_s0 + $0x10] sm:$0xff]  }
   0x2   :  { %228 = vmatprep.subr.bf16.mxu0 %v244_v0  ;;  %240 = vmatprep.subr.bf16.mxu1 %v244_v0  ;;  %v246_v2 = vld [vmem:[%s316_s0] sm:$0xff]   ;;  %v248_v4 = vld [vmem:[%s316_s0 + $0x8] sm:$0xff]   ;;  %v249_v5 = vld [vmem:[%s316_s0 + $0x18] sm:$0xff]  }
   0x3   :  { %229 = vmatpush3.bf16.msra.mxu0 %v244_v0  ;;  %242 = vmatpush3.bf16.msra.mxu1 %v244_v0  ;;  %v221_v6 = vld [vmem:[%s317_s2] ss:$0 sm:$0xff] }
   0x4   :  { %230 = vmatprep.subr.bf16.mxu0 %v245_v1  ;;  %241 = vmatprep.subr.bf16.mxu1 %v245_v1 }
   0x5   :  { %232 = vmatprep.mubr.msk.bf16.mxu0 %vm79_vm0, %v246_v2  ;;  %236 = vmatprep.mubr.msk.bf16.mxu1 %vm79_vm0, %v247_v3 }
   0x7   :  { %231 = vmatpush3.bf16.msra.mxu0 %v245_v1  ;;  %243 = vmatpush3.bf16.msra.mxu1 %v245_v1 }
   0xa   :  { %233 = vmatmul.mubr.msk.bf16.vlgmr.msra.gmra.mrb[0].mxu0 %vm79_vm0, %v248_v4  ;;  %237 = vmatmul.mubr.msk.bf16.vlgmr.msra.gmra.mrb[0].mxu1 %vm79_vm0, %v249_v5 }
  0xdd   :  { %v234_v7 = vpop.f32.mrb[0].mxu0  ;;  %v238_v8 = vpop.f32.mrb[0].mxu1 }
  0xde   :  { %v193_v9 = vadd.f32 %v234_v7, %v221_v6  ;;  %v197_v10 = vadd.f32 %v238_v8, %v221_v6  ;;  %v126_v11 = vpop.f32.mrb[1].mxu0  ;;  %v142_v12 = vpop.f32.mrb[1].mxu1 }
  0xdf   :  { %v191_v13 = vadd.f32 %v221_v6, %v126_v11  ;;  %v195_v14 = vadd.f32 %v221_v6, %v142_v12  ;;  %v235_v15 = vpop.f32.mrb[2].mxu0  ;;  %v239_v16 = vpop.f32.mrb[2].mxu1 }
  0xe0   :  { %201 = vst [vmem:[%s318_s3 + $0x10] sm:$0xff] %v193_v9  ;;  %205 = vst [vmem:[%s318_s3 + $0x30] sm:$0xff] %v197_v10  ;;  %v194_v17 = vadd.f32 %v235_v15, %v221_v6  ;;  %v198_v18 = vadd.f32 %v239_v16, %v221_v6  ;;  %v129_v19 = vpop.f32.mrb[3].mxu0  ;;  %v145_v20 = vpop.f32.mrb[3].mxu1 }
  0xe1   :  { %199 = vst [vmem:[%s318_s3] sm:$0xff] %v191_v13  ;;  %203 = vst [vmem:[%s318_s3 + $0x20] sm:$0xff] %v195_v14  ;;  %v192_v21 = vadd.f32 %v221_v6, %v129_v19  ;;  %v196_v22 = vadd.f32 %v221_v6, %v145_v20 }
  0xe2   :  { %202 = vst [vmem:[%s318_s3 + $0x18] sm:$0xff] %v194_v17  ;;  %206 = vst [vmem:[%s318_s3 + $0x38] sm:$0xff] %v198_v18 }
  0xe3   :  { %200 = vst [vmem:[%s318_s3 + $0x8] sm:$0xff] %v192_v21  ;;  %204 = vst [vmem:[%s318_s3 + $0x28] sm:$0xff] %v196_v22 }

// kernel: _device_forward.3
= control target key start
LH: loop header
LB: loop body
LE: loop exit
PB: predicated region body
PF: predicated region fallthrough
CT: control target
= control target key end

     0   :  { %vm256_vm0 = vcmask 261120   ;;  %vm19_vm1 = vcmask 130048   ;;  %v598_v30 = vmov 0.0   ;;  %s764_s1 = inlined_call_operand.vmem [shape: bf16[288,16], index: 1, kind: input, shape index: {}]   ;;  %s765_s0 = inlined_call_operand.vmem [shape: bf16[64,288], index: 0, kind: input, shape index: {}]   ;;  %s766_s2 = inlined_call_operand.vmem [shape: f32[1,16], index: 2, kind: input, shape index: {}]   ;;  %s767_s3 = inlined_call_operand.vmem [shape: f32[64,16], index: 3, kind: output, shape index: {}]  }
   0x1   :  { %v564_v0 = vld [vmem:[%s764_s1 + $0x40] sm:$0xff]   ;;  %v566_v2 = vld [vmem:[%s764_s1 + $0x48] sm:$0xff]   ;;  %v568_v4 = vld [vmem:[%s764_s1 + $0x50] sm:$0xff]   ;;  %22 = vst.msk [vmem:[#allocation2 + $0x10] sm:$0xff] %vm19_vm1, %v598_v30 }
   0x2   :  { %v565_v1 = vld [vmem:[%s764_s1] sm:$0xff]   ;;  %489 = vmatprep.subr.bf16.mxu0 %v564_v0  ;;  %547 = vmatprep.subr.bf16.mxu1 %v564_v0  ;;  %v567_v3 = vld [vmem:[%s764_s1 + $0x8] sm:$0xff]   ;;  %v569_v5 = vld [vmem:[%s764_s1 + $0x10] sm:$0xff]   ;;  %20 = vst.msk [vmem:[#allocation2] sm:$0xff] %vm19_vm1, %v598_v30 }
   0x3   :  { %490 = vmatpush3.bf16.msra.mxu0 %v565_v1  ;;  %555 = vmatpush3.bf16.msra.mxu1 %v565_v1  ;;  %v570_v6 = vld [vmem:[%s764_s1 + $0x58] sm:$0xff]   ;;  %v572_v8 = vld [vmem:[%s764_s1 + $0x60] sm:$0xff]   ;;  %v574_v10 = vld [vmem:[%s764_s1 + $0x68] sm:$0xff]   ;;  %21 = vst.msk [vmem:[#allocation2 + $0x8] sm:$0xff] %vm19_vm1, %v598_v30 }
   0x4   :  { %491 = vmatprep.subr.bf16.mxu0 %v566_v2  ;;  %548 = vmatprep.subr.bf16.mxu1 %v566_v2  ;;  %v571_v7 = vld [vmem:[%s764_s1 + $0x18] sm:$0xff]   ;;  %v573_v9 = vld [vmem:[%s764_s1 + $0x20] sm:$0xff]   ;;  %v575_v13 = vld [vmem:[%s764_s1 + $0x28] sm:$0xff]   ;;  %23 = vst.msk [vmem:[#allocation2 + $0x18] sm:$0xff] %vm19_vm1, %v598_v30 }
   0x5   :  { %v582_v11 = vld [vmem:[%s765_s0 + $0x4] ss:$12 sps:$4 sm:$0xff]   ;;  %v585_v12 = vld [vmem:[%s765_s0 + $0x4c] ss:$12 sps:$4 sm:$0xff]   ;;  %v583_v20 = vld [vmem:[%s765_s0 + $0x48] ss:$12 sps:$4 sm:$0xff]  }
   0x6   :  { %v576_v14 = vld [vmem:[%s764_s1 + $0x70] sm:$0xff]   ;;  %301 = vmatprep.mubr.bf16.mxu0 %v582_v11  ;;  %325 = vmatprep.mubr.bf16.mxu1 %v585_v12  ;;  %v578_v16 = vld [vmem:[%s764_s1 + $0x78] sm:$0xff]   ;;  %v586_v18 = vld [vmem:[%s764_s1 + $0x80] sm:$0xff]   ;;  %24 = vst.msk [vmem:[#allocation2 + $0x20] sm:$0xff] %vm19_vm1, %v598_v30 }
   0x7   :  { %492 = vmatpush3.bf16.msra.mxu0 %v567_v3  ;;  %556 = vmatpush3.bf16.msra.mxu1 %v567_v3  ;;  %v577_v15 = vld [vmem:[%s764_s1 + $0x30] sm:$0xff]   ;;  %v579_v17 = vld [vmem:[%s764_s1 + $0x38] sm:$0xff]   ;;  %v580_v19 = vld [vmem:[%s765_s0] ss:$12 sps:$4 sm:$0xff]   ;;  %25 = vst.msk [vmem:[#allocation2 + $0x28] sm:$0xff] %vm19_vm1, %v598_v30 }
   0x8   :  { %493 = vmatprep.subr.bf16.mxu0 %v568_v4  ;;  %549 = vmatprep.subr.bf16.mxu1 %v568_v4  ;;  %v588_v21 = vld [vmem:[%s765_s0 + $0x1c] ss:$12 sps:$4 sm:$0xff]   ;;  %v591_v24 = vld [vmem:[%s765_s0 + $0x18] ss:$12 sps:$4 sm:$0xff]   ;;  %v592_v25 = vld [vmem:[%s765_s0 + $0x20] ss:$12 sps:$4 sm:$0xff]  }
   0x9   :  { %v587_v22 = vld [vmem:[%s764_s1 + $0x88] sm:$0xff]   ;;  %v593_v26 = vld [vmem:[%s765_s0 + $0x34] ss:$12 sps:$4 sm:$0xff]   ;;  %v595_v27 = vld [vmem:[%s765_s0 + $0x38] ss:$12 sps:$4 sm:$0xff]   ;;  %26 = vst.msk [vmem:[#allocation2 + $0x30] sm:$0xff] %vm19_vm1, %v598_v30 }
   0xa   :  { %v590_v23 = vld [vmem:[%s765_s0 + $0x8] ss:$12 sps:$4 sm:$0xff]   ;;  %v596_v28 = vld [vmem:[%s765_s0 + $0x30] ss:$12 sps:$4 sm:$0xff]   ;;  %27 = vst.msk [vmem:[#allocation2 + $0x38] sm:$0xff] %vm19_vm1, %v598_v30  ;;  %v28_v46 = vld [vmem:[#allocation2] sm:$0xff] }
   0xb   :  { %494 = vmatpush3.bf16.msra.mxu0 %v569_v5  ;;  %557 = vmatpush3.bf16.msra.mxu1 %v569_v5  ;;  %v597_v29 = vld [vmem:[%s765_s0 + $0x50] ss:$12 sps:$4 sm:$0xff]   ;;  %v29_v54 = vld [vmem:[#allocation2 + $0x8] sm:$0xff]  ;;  %v488_v11 = vld [vmem:[%s766_s2] ss:$0 sm:$0xff] }
   0xc   :  { %495 = vmatprep.subr.bf16.mxu0 %v570_v6  ;;  %550 = vmatprep.subr.bf16.mxu1 %v570_v6  ;;  %v30_v52 = vld [vmem:[#allocation2 + $0x10] sm:$0xff]  ;;  %v31_v60 = vld [vmem:[#allocation2 + $0x18] sm:$0xff] }
   0xf   :  { %496 = vmatpush3.bf16.msra.mxu0 %v571_v7  ;;  %558 = vmatpush3.bf16.msra.mxu1 %v571_v7 }
  0x10   :  { %497 = vmatprep.subr.bf16.mxu0 %v572_v8  ;;  %551 = vmatprep.subr.bf16.mxu1 %v572_v8  ;;  %v34_v2 = vld [vmem:[#allocation2 + $0x30] sm:$0xff] }
  0x13   :  { %498 = vmatpush3.bf16.msra.mxu0 %v573_v9  ;;  %559 = vmatpush3.bf16.msra.mxu1 %v573_v9  ;;  %v35_v9 = vld [vmem:[#allocation2 + $0x38] sm:$0xff] }
  0x14   :  { %499 = vmatprep.subr.bf16.mxu0 %v574_v10  ;;  %552 = vmatprep.subr.bf16.mxu1 %v574_v10 }
  0x17   :  { %500 = vmatpush3.bf16.msra.mxu0 %v575_v13  ;;  %560 = vmatpush3.bf16.msra.mxu1 %v575_v13  ;;  %v32_v13 = vld [vmem:[#allocation2 + $0x20] sm:$0xff] }
  0x18   :  { %501 = vmatprep.subr.bf16.mxu0 %v576_v14  ;;  %553 = vmatprep.subr.bf16.mxu1 %v576_v14 }
  0x1b   :  { %502 = vmatpush3.bf16.msra.mxu0 %v577_v15  ;;  %561 = vmatpush3.bf16.msra.mxu1 %v577_v15 }
  0x1c   :  { %503 = vmatprep.subr.bf16.mxu0 %v578_v16  ;;  %554 = vmatprep.subr.bf16.mxu1 %v578_v16 }
  0x1f   :  { %504 = vmatpush3.bf16.msra.mxu0 %v579_v17  ;;  %562 = vmatpush3.bf16.msra.mxu1 %v579_v17 }
  0x20   :  { %535 = vmatprep.subr.bf16.mxu1 %v586_v18 }
  0x22   :  { %302 = vmatmul.mubr.bf16.vlgmr.msra.gmra.mrb[0].mxu0 %v580_v19  ;;  %326 = vmatmul.mubr.bf16.vlgmr.msra.gmra.mrb[0].mxu1 %v583_v20 }
  0x23   :  { %536 = vmatpush3.bf16.msra.mxu1 %v586_v18  ;;  %309 = vmatprep.mubr.bf16.mxu0 %v588_v21  ;;  %v33_v21 = vld [vmem:[#allocation2 + $0x28] sm:$0xff] }
  0x24   :  { %537 = vmatprep.subr.bf16.mxu1 %v587_v22  ;;  %539 = vmatprep.mubr.msk.bf16.mxu1 %vm256_vm0, %v590_v23 }
  0x27   :  { %538 = vmatpush3.bf16.msra.mxu1 %v587_v22 }
  0x2a   :  { %310 = vmatmul.mubr.bf16.gmra.mrb[4].mxu0 %v591_v24  ;;  %540 = vmatmul.mubr.msk.bf16.vlgmr.msra.gmra.mrb[4].mxu1 %vm256_vm0, %v592_v25 }
  0x2b   :  { %317 = vmatprep.mubr.bf16.mxu0 %v593_v26  ;;  %543 = vmatprep.mubr.msk.bf16.mxu1 %vm256_vm0, %v595_v27 }
  0x32   :  { %318 = vmatmul.mubr.bf16.gmra.mrb[8].mxu0 %v596_v28  ;;  %544 = vmatmul.mubr.msk.bf16.gmra.mrb[8].mxu1 %vm256_vm0, %v597_v29 }
  0xf5   :  { %v505_v31 = vpop.f32.mrb[0].mxu0  ;;  %v523_v32 = vpop.f32.mrb[0].mxu1 }
  0xf6   :  { %v506_v33 = vpop.f32.mrb[1].mxu0  ;;  %v524_v34 = vpop.f32.mrb[1].mxu1 }
  0xf7   :  { %v507_v35 = vadd.f32 %v506_v33, %v505_v31  ;;  %v525_v36 = vadd.f32 %v524_v34, %v523_v32  ;;  %v508_v37 = vpop.f32.mrb[2].mxu0  ;;  %v526_v38 = vpop.f32.mrb[2].mxu1 }
  0xf8   :  { %v509_v39 = vpop.f32.mrb[3].mxu0  ;;  %v527_v40 = vpop.f32.mrb[3].mxu1 }
  0xf9   :  { %v510_v41 = vadd.f32 %v509_v39, %v508_v37  ;;  %v528_v42 = vadd.f32 %v527_v40, %v526_v38 }
  0xfd   :  { %v511_v43 = vpop.f32.mrb[4].mxu0  ;;  %v541_v44 = vpop.f32.mrb[4].mxu1 }
  0xfe   :  { %v512_v45 = vpop.f32.mrb[5].mxu0  ;;  %v368_v47 = vpop.f32.mrb[5].mxu1 }
  0xff   :  { %v513_v48 = vadd.f32 %v512_v45, %v511_v43  ;;  %v369_v49 = vadd.f32 %v507_v35, %v368_v47  ;;  %v514_v50 = vpop.f32.mrb[6].mxu0  ;;  %v542_v51 = vpop.f32.mrb[6].mxu1 }
 0x100   :  { %v515_v53 = vpop.f32.mrb[7].mxu0  ;;  %v371_v55 = vpop.f32.mrb[7].mxu1 }
 0x101   :  { %v377_v56 = vadd.f32 %v541_v44, %v513_v48  ;;  %v399_v57 = vadd.f32 %v369_v49, %v28_v46  ;;  %v516_v58 = vadd.f32 %v515_v53, %v514_v50  ;;  %v372_v59 = vadd.f32 %v510_v41, %v371_v55 }
 0x103   :  { %v401_v61 = vadd.f32 %v377_v56, %v30_v52  ;;  %408 = vst.msk [vmem:[#allocation2] sm:$0xff] %vm19_vm1, %v399_v57  ;;  %v380_v62 = vadd.f32 %v542_v51, %v516_v58  ;;  %v400_v63 = vadd.f32 %v372_v59, %v29_v54 }
 0x105   :  { %410 = vst.msk [vmem:[#allocation2 + $0x10] sm:$0xff] %vm19_vm1, %v401_v61  ;;  %v402_v0 = vadd.f32 %v380_v62, %v31_v60  ;;  %409 = vst.msk [vmem:[#allocation2 + $0x8] sm:$0xff] %vm19_vm1, %v400_v63  ;;  %v517_v1 = vpop.f32.mrb[8].mxu0  ;;  %v545_v3 = vpop.f32.mrb[8].mxu1 }
 0x106   :  { %v393_v4 = vadd.f32 %v545_v3, %v525_v36  ;;  %v518_v5 = vpop.f32.mrb[9].mxu0  ;;  %v384_v6 = vpop.f32.mrb[9].mxu1 }
 0x107   :  { %411 = vst.msk [vmem:[#allocation2 + $0x18] sm:$0xff] %vm19_vm1, %v402_v0  ;;  %v519_v7 = vadd.f32 %v518_v5, %v517_v1  ;;  %v520_v8 = vpop.f32.mrb[10].mxu0  ;;  %v546_v10 = vpop.f32.mrb[10].mxu1 }
 0x108   :  { %v405_v12 = vadd.f32 %v393_v4, %v34_v2  ;;  %v396_v14 = vadd.f32 %v546_v10, %v528_v42  ;;  %v521_v15 = vpop.f32.mrb[11].mxu0  ;;  %v387_v16 = vpop.f32.mrb[11].mxu1 }
 0x109   :  { %v385_v17 = vadd.f32 %v519_v7, %v384_v6  ;;  %v522_v18 = vadd.f32 %v521_v15, %v520_v8 }
 0x10a   :  { %v419_v19 = vld [vmem:[#allocation2] sm:$0xff]  ;;  %414 = vst.msk [vmem:[#allocation2 + $0x30] sm:$0xff] %vm19_vm1, %v405_v12  ;;  %v406_v20 = vadd.f32 %v396_v14, %v35_v9 }
 0x10b   :  { %v434_v22 = vadd.f32 %v488_v11, %v419_v19  ;;  %v403_v23 = vadd.f32 %v385_v17, %v32_v13  ;;  %v388_v24 = vadd.f32 %v522_v18, %v387_v16 }
 0x10c   :  { %v421_v25 = vld [vmem:[#allocation2 + $0x10] sm:$0xff]  ;;  %v420_v26 = vld [vmem:[#allocation2 + $0x8] sm:$0xff]  ;;  %415 = vst.msk [vmem:[#allocation2 + $0x38] sm:$0xff] %vm19_vm1, %v406_v20 }
 0x10d   :  { %v436_v27 = vadd.f32 %v488_v11, %v421_v25  ;;  %442 = vst.msk [vmem:[%s767_s3] sm:$0xff] %vm19_vm1, %v434_v22  ;;  %v435_v28 = vadd.f32 %v488_v11, %v420_v26  ;;  %412 = vst.msk [vmem:[#allocation2 + $0x20] sm:$0xff] %vm19_vm1, %v403_v23  ;;  %v404_v29 = vadd.f32 %v388_v24, %v33_v21 }
 0x10e   :  { %v422_v30 = vld [vmem:[#allocation2 + $0x18] sm:$0xff] }
 0x10f   :  { %444 = vst.msk [vmem:[%s767_s3 + $0x10] sm:$0xff] %vm19_vm1, %v436_v27  ;;  %v437_v31 = vadd.f32 %v488_v11, %v422_v30  ;;  %443 = vst.msk [vmem:[%s767_s3 + $0x8] sm:$0xff] %vm19_vm1, %v435_v28 }
 0x110   :  { %413 = vst.msk [vmem:[#allocation2 + $0x28] sm:$0xff] %vm19_vm1, %v404_v29 }
 0x111   :  { %445 = vst.msk [vmem:[%s767_s3 + $0x18] sm:$0xff] %vm19_vm1, %v437_v31  ;;  %v425_v32 = vld [vmem:[#allocation2 + $0x30] sm:$0xff] }
 0x112   :  { %v440_v33 = vadd.f32 %v488_v11, %v425_v32 }
 0x113   :  { %v426_v34 = vld [vmem:[#allocation2 + $0x38] sm:$0xff] }
 0x114   :  { %448 = vst.msk [vmem:[%s767_s3 + $0x30] sm:$0xff] %vm19_vm1, %v440_v33  ;;  %v423_v35 = vld [vmem:[#allocation2 + $0x20] sm:$0xff]  ;;  %v441_v36 = vadd.f32 %v488_v11, %v426_v34 }
 0x115   :  { %v438_v37 = vadd.f32 %v488_v11, %v423_v35 }
 0x116   :  { %449 = vst.msk [vmem:[%s767_s3 + $0x38] sm:$0xff] %vm19_vm1, %v441_v36 }
 0x117   :  { %v424_v38 = vld [vmem:[#allocation2 + $0x28] sm:$0xff]  ;;  %446 = vst.msk [vmem:[%s767_s3 + $0x20] sm:$0xff] %vm19_vm1, %v438_v37 }
 0x118   :  { %v439_v39 = vadd.f32 %v488_v11, %v424_v38 }
 0x11a   :  { %447 = vst.msk [vmem:[%s767_s3 + $0x28] sm:$0xff] %vm19_vm1, %v439_v39 }

// kernel: _device_forward.5
= control target key start
LH: loop header
LB: loop body
LE: loop exit
PB: predicated region body
PF: predicated region fallthrough
CT: control target
= control target key end

     0   :  { %s2241_s23 = smov 0   ;;  %s2243_s24 = smov 0   ;;  %s2570_s0 = inlined_call_operand.vmem [shape: f32[2,32], index: 0, kind: input, shape index: {}]   ;;  %s2571_s1 = inlined_call_operand.vmem [shape: bf16[128,32], index: 1, kind: input, shape index: {}]   ;;  %s2572_s2 = inlined_call_operand.vmem [shape: f32[2,32,16], index: 2, kind: input, shape index: {}]   ;;  %s2573_s3 = inlined_call_operand.vmem [shape: bf16[2,32,128], index: 3, kind: input, shape index: {}]   ;;  %s2574_s4 = inlined_call_operand.vmem [shape: bf16[32,128], index: 4, kind: input, shape index: {}]   ;;  %s2575_s5 = inlined_call_operand.vmem [shape: bf16[32,128], index: 5, kind: input, shape index: {}]   ;;  %s2576_s6 = inlined_call_operand.vmem [shape: f32[1,128], index: 6, kind: input, shape index: {}]   ;;  %s2577_s7 = inlined_call_operand.vmem [shape: bf16[32,128], index: 7, kind: input, shape index: {}]   ;;  %s2578_s8 = inlined_call_operand.vmem [shape: bf16[32,128], index: 8, kind: input, shape index: {}]   ;;  %s2579_s9 = inlined_call_operand.vmem [shape: f32[1,128], index: 9, kind: input, shape index: {}]   ;;  %s2580_s10 = inlined_call_operand.vmem [shape: bf16[32,16], index: 10, kind: input, shape index: {}]   ;;  %s2581_s11 = inlined_call_operand.vmem [shape: f32[1,16], index: 11, kind: input, shape index: {}]   ;;  %s2582_s12 = inlined_call_operand.vmem [shape: f32[1,1,16], index: 12, kind: input, shape index: {}]   ;;  %s2583_s13 = inlined_call_operand.<no memory space> [shape: f32[1,1], index: 13, kind: input, shape index: {}]   ;;  %s2584_s14 = inlined_call_operand.vmem [shape: f32[1,128], index: 14, kind: input, shape index: {}]   ;;  %s2585_s15 = inlined_call_operand.vmem [shape: f32[7,2,128], index: 15, kind: output, shape index: {0}]   ;;  %s2586_s16 = inlined_call_operand.vmem [shape: s32[7,2,1], index: 16, kind: output, shape index: {1}]  }
   0x1   :  { %2589 = sst [smem:[#allocation9_spill]] %s2570_s0  ;;  %v22_v0 = vstv %s2583_s13  ;;  %s2245_s25 = smov 0  }
   0x2   :  { %23 = vst [vmem:[#allocation8] sm:$0x1] %v22_v0 }
   0x3 LB: > { %s38_s13 = sadd.s32 1, %s2133_s24  ;;  %p1844_p0 = scmp.ge.s32.totalorder %s2137_s25, 1  ;;  %s2137_s25 = sphi %s2245_s25, %s29_s25   ;;  %s2133_s24 = sphi %s2243_s24, %s2593_s24   ;;  %s2129_s23 = sphi %s2241_s23, %s2592_s23  }
   0x4   : > { %p39_p1 = scmp.ge.s32.totalorder %s38_s13, 7  ;;  %p506_p2 = scmp.lt.s32.totalorder %s2137_s25, 8 }
   0x6   : > { %s2595_s13 = smov (%p39_p1, %s38_s13), 0  ;;  %p507_p3 = pnand %p1844_p0, %p506_p2 }
   0x7   : > { %p594_p4 = scmp.lt.s32.totalorder (!%p507_p3), %s2129_s23, 6  ;;  %v609_v1 = vlaneseq (!%p507_p3)  ;;  %p1847_p5 = scmp.ne.s32.totalorder (!%p507_p3), %s2129_s23, 0 }
   0x8   : > { %510 = sbr.rel (%p507_p3) target bundleno = 3354 (0xd1a), region = 80 }
   0x9   : > { %v2264_v2 = vand.u32 (!%p507_p3), 127, %v609_v1 }
   0xf   : > { %s595_s26 = scalar_select %p594_p4, %s2129_s23, 6 }
  0x10   : > { %614 = sbr.rel (%p1847_p5) target bundleno = 24 (0x18), region = 84  ;;  %vm615_vm0 = vcmask (!%p1847_p5), 254976   ;;  %vm620_vm1 = vcmask (!%p1847_p5), 1024   ;;  %s2590_s21 = sld [smem:[#allocation9_spill]] (!%p1847_p5)  ;;  %v2139_v4 = vmov (!%p1847_p5), 0.0   ;;  %v2140_v5 = vmov (!%p1847_p5), 10  }
  0x11   : > { %s1845_s27 = sshll.u32 %s595_s26, 1  ;;  %616 = vst.msk [vmem:[#allocation2] sm:$0x3] (!%p1847_p5), %vm615_vm0, %v2139_v4  ;;  %617 = vst.msk [vmem:[#allocation3] sm:$0x3] (!%p1847_p5), %vm615_vm0, %v2139_v4 }
  0x12   : > { %s2269_s30 = scalar_lea.vmem %s2585_s15, %s1845_s27  ;;  %s2274_s18 = scalar_lea.vmem %s2586_s16, %s1845_s27  ;;  %618 = vst.msk [vmem:[#allocation4] sm:$0x3] (!%p1847_p5), %vm615_vm0, %v2139_v4  ;;  %619 = vst.msk [vmem:[#allocation5] sm:$0x3] (!%p1847_p5), %vm615_vm0, %v2139_v4 }
  0x13   : > { %621 = vst.msk [vmem:[#allocation7] sm:$0x3] (!%p1847_p5), %vm620_vm1, %v2140_v5 }
  0x16   : > { %v622_v3 = vld [vmem:[%s2590_s21] sm:$0x3] (!%p1847_p5) }
  0x17   : > { %623 = vst.msk [vmem:[#allocation6] sm:$0x3] %vm615_vm0, %v622_v3 }
  0x18 PF: > { %p1848_p6 = scmp.eq.s32.totalorder %s2129_s23, 0 }
  0x19   : > { %v2141_v7 = vmov (!%p1848_p6), 0   ;;  %v2142_v8 = vmov (!%p1848_p6), 0.0   ;;  %v2039_v9 = vld [vmem:[%s2571_s1] sm:$0xff] (!%p1848_p6)   ;;  %v2040_v10 = vld [vmem:[%s2571_s1 + $0x8] sm:$0xff] (!%p1848_p6)   ;;  %vm2143_vm2 = vmmov (!%p1848_p6), 0   ;;  %v2041_v11 = vld [vmem:[%s2571_s1 + $0x10] sm:$0xff] (!%p1848_p6)  }
  0x1a   : > { %627 = sbr.rel (%p1848_p6) target bundleno = 373 (0x175), region = 88  ;;  %2038 = vset.pattern.permute.xlu0 (!%p1848_p6), %v2141_v7  ;;  %1922 = vmatprep.subr.bf16.mxu0 (!%p1848_p6), %v2142_v8  ;;  %v2042_v12 = vld [vmem:[%s2571_s1 + $0x18] sm:$0xff] (!%p1848_p6)   ;;  %v2043_v13 = vld [vmem:[%s2571_s1 + $0x20] sm:$0xff] (!%p1848_p6)   ;;  %v2044_v14 = vld [vmem:[%s2571_s1 + $0x28] sm:$0xff] (!%p1848_p6)   ;;  %v2144_v18 = vmov (!%p1848_p6), 1.0|1.0  }
  0x1b   : > { %v628_v6 = vld [vmem:[#allocation7] sm:$0x3] (!%p1848_p6)  ;;  %1923 = vmatpush3.bf16.msra.mxu0 (!%p1848_p6), %v2039_v9  ;;  %1938 = vmatprep.mubr.msk.bf16.mxu0 (!%p1848_p6), %vm2143_vm2, %v2142_v8  ;;  %v2045_v15 = vld [vmem:[%s2571_s1 + $0x30] sm:$0xff] (!%p1848_p6)   ;;  %v2046_v16 = vld [vmem:[%s2571_s1 + $0x38] sm:$0xff] (!%p1848_p6)   ;;  %vm740_vm5 = vcmask (!%p1848_p6), 254976  }
  0x1c   : > { %630 = vperm.xlu0 (!%p1848_p6), %2038, %v628_v6   ;;  %1924 = vmatprep.subr.bf16.mxu0 (!%p1848_p6), %v2142_v8 }
  0x1f   : > { %1925 = vmatpush3.bf16.msra.mxu0 (!%p1848_p6), %v2040_v10 }
  0x20   : > { %1926 = vmatprep.subr.bf16.mxu0 (!%p1848_p6), %v2142_v8 }
  0x23   : > { %1927 = vmatpush3.bf16.msra.mxu0 %v2041_v11 }
  0x24   : > { %1928 = vmatprep.subr.bf16.mxu0 %v2142_v8 }
  0x27   : > { %1929 = vmatpush3.bf16.msra.mxu0 %v2042_v12 }
  0x28   : > { %1930 = vmatprep.subr.bf16.mxu0 %v2142_v8 }
  0x2b   : > { %1931 = vmatpush3.bf16.msra.mxu0 %v2043_v13 }
  0x2c   : > { %1932 = vmatprep.subr.bf16.mxu0 %v2142_v8 }
  0x2f   : > { %1933 = vmatpush3.bf16.msra.mxu0 %v2044_v14 }
  0x30   : > { %1934 = vmatprep.subr.bf16.mxu0 %v2142_v8 }
  0x33   : > { %1935 = vmatpush3.bf16.msra.mxu0 %v2045_v15 }
  0x34   : > { %1936 = vmatprep.subr.bf16.mxu0 %v2142_v8 }
  0x37   : > { %1937 = vmatpush3.bf16.msra.mxu0 %v2046_v16 }
  0x9b   : > { %v631_v17 = vpop.permute.xlu0 %630 }
  0x9c   : > { %vm632_vm3 = vcmp.eq.s32.totalorder %v631_v17, %v2264_v2 }
  0x9d   : > { %vm1858_vm4 = vmpackc.low %vm632_vm3, %vm632_vm3 }
  0x9e   : > { %1939 = vmatmul.mubr.msk.bf16.vlgmr.msra.gmra.mrb[0].mxu0 %vm1858_vm4, %v2144_v18 }
 0x171   : > { %v734_v19 = vpop.f32.mrb[0].mxu0 }
 0x172   : > { %741 = vst.msk [vmem:[#allocation6] sm:$0x3] %vm740_vm5, %v734_v19  ;;  %v1940_v20 = vpop.f32.mrb[1].mxu0 }
 0x173   : > { %v737_v21 = vpop.f32.mrb[2].mxu0 }
 0x174   : > { %v1941_v22 = vpop.f32.mrb[3].mxu0 }
 0x175 PF: > { %v2049_v23 = vld [vmem:[%s2575_s5] sm:$0xff]   ;;  %v2145_v24 = vmov 0.0   ;;  %v2051_v26 = vld [vmem:[%s2575_s5 + $0x8] sm:$0xff]   ;;  %vm2146_vm6 = vmmov 0   ;;  %vm767_vm7 = vcmask 261120   ;;  %s2147_s17 = smov 64  }
 0x176   : > { %1942 = vmatprep.subr.bf16.mxu0 %v2145_v24  ;;  %1950 = vmatprep.subr.bf16.mxu1 %v2145_v24  ;;  %v2050_v25 = vld [vmem:[%s2574_s4] sm:$0xff]   ;;  %v2052_v27 = vld [vmem:[%s2574_s4 + $0x8] sm:$0xff]   ;;  %s2587_s19 = smov 32   ;;  %vm1226_vm8 = vcmask 130048   ;;  %vm1286_vm9 = vcmask 130112   ;;  %vm1293_vm10 = vcmask 195712  }
 0x177   : > { %1943 = vmatpush3.bf16.msra.mxu0 %v2049_v23  ;;  %1946 = vmatprep.mubr.msk.bf16.mxu0 %vm2146_vm6, %v2145_v24  ;;  %v743_v28 = vld [vmem:[#allocation2] sm:$0x3]  ;;  %v744_v44 = vld [vmem:[#allocation3] sm:$0x3]  ;;  %v2055_v57 = vld [vmem:[%s2578_s8 + $0x8] sm:$0xff]   ;;  %vm1300_vm11 = vcmask 261312  }
 0x178   : > { %1951 = vmatpush3.bf16.msra.mxu1 %v2050_v25  ;;  %1944 = vmatprep.subr.bf16.mxu0 %v2145_v24  ;;  %v750_v30 = vpack.c.bf16 %v743_v28, %v743_v28  ;;  %v1866_v34 = vld [vmem:[%s2576_s6] ss:$0 sm:$0xff]  ;;  %v2056_v58 = vld [vmem:[%s2577_s7 + $0x8] sm:$0xff]   ;;  %v902_v59 = vld [vmem:[#allocation4] sm:$0x3]  ;;  %vm1321_vm12 = vcmask 1041409  }
 0x179   : > { %1952 = vmatprep.subr.bf16.mxu1 %v2145_v24  ;;  %1954 = vmatprep.mubr.msk.bf16.mxu1 %vm2146_vm6, %v2145_v24  ;;  %v742_v29 = vld [vmem:[#allocation6] sm:$0x3]  ;;  %v2053_v55 = vld [vmem:[%s2578_s8] sm:$0xff]   ;;  %v909_v60 = vpack.c.bf16 %v902_v59, %v902_v59  ;;  %vm1067_vm13 = vcmask 254976   ;;  %vm1671_vm14 = vcmp.lt.s32.totalorder %v2264_v2, 12  ;;  %vm1673_vm15 = vcmask 1041408  }
 0x17a   : > { %v745_v31 = vpack.c.bf16 %v742_v29, %v742_v29  ;;  %v2054_v56 = vld [vmem:[%s2577_s7] sm:$0xff]   ;;  %v2058_v29 = vld [vmem:[%s2580_s10 + $0x8] sm:$0xff]   ;;  %s2151_s29 = smov 96   ;;  %vm1684_vm1 = vcmask 1024  }
 0x17b   : > { %1945 = vmatpush3.bf16.msra.mxu0 %v2051_v26  ;;  %v903_v3 = vld [vmem:[#allocation5] sm:$0x3]  ;;  %v1874_v10 = vld [vmem:[%s2579_s9] ss:$0 sm:$0xff] }
 0x17c   : > { %1953 = vmatpush3.bf16.msra.mxu1 %v2052_v27  ;;  %1958 = vmatprep.subr.bf16.mxu0 %v2145_v24  ;;  %v2057_v28 = vld [vmem:[%s2580_s10] sm:$0xff]  }
 0x17d   : > { %1966 = vmatprep.subr.bf16.mxu1 %v2145_v24 }
 0x17e   : > { %1947 = vmatmul.mubr.msk.bf16.vlgmr.msra.gmra.mrb[0].mxu0 %vm767_vm7, %v750_v30 }
 0x17f   : > { %1955 = vmatmul.mubr.msk.bf16.vlgmr.msra.gmra.mrb[0].mxu1 %vm767_vm7, %v745_v31  ;;  %1962 = vmatprep.mubr.msk.bf16.mxu0 %vm2146_vm6, %v2145_v24 }
 0x180   : > { %1970 = vmatprep.mubr.msk.bf16.mxu1 %vm2146_vm6, %v2145_v24  ;;  %1959 = vmatpush3.bf16.msra.mxu0 %v2053_v55 }
 0x181   : > { %1967 = vmatpush3.bf16.msra.mxu1 %v2054_v56  ;;  %1960 = vmatprep.subr.bf16.mxu0 %v2145_v24  ;;  %v1158_v56 = vld [vmem:[%s2572_s2 + $0x20] sm:$0xff] }
 0x182   : > { %1968 = vmatprep.subr.bf16.mxu1 %v2145_v24 }
 0x184   : > { %1961 = vmatpush3.bf16.msra.mxu0 %v2055_v57  ;;  %v1157_v57 = vld [vmem:[%s2572_s2 + $0x18] sm:$0xff] }
 0x185   : > { %1969 = vmatpush3.bf16.msra.mxu1 %v2056_v58  ;;  %1974 = vmatprep.subr.bf16.mxu0 %v2145_v24 }
 0x186   : > { %1982 = vmatprep.subr.bf16.mxu1 %v2145_v24 }
 0x187   : > { %1963 = vmatmul.mubr.msk.bf16.vlgmr.msra.gmra.mrb[4].mxu0 %vm767_vm7, %v909_v60 }
 0x188   : > { %1978 = vmatprep.mubr.msk.bf16.mxu0 %vm2146_vm6, %v2145_v24  ;;  %1975 = vmatpush3.bf16.msra.mxu0 %v2057_v28 }
 0x189   : > { %1976 = vmatprep.subr.bf16.mxu0 %v2145_v24 }
 0x18c   : > { %1977 = vmatpush3.bf16.msra.mxu0 %v2058_v29 }
 0x18d   : > { %1990 = vmatprep.subr.bf16.mxu0 %v2145_v24 }
 0x251   : > { %v805_v32 = vpop.f32.mrb[0].mxu0 }
 0x252   : > { %v860_v33 = vpop.f32.mrb[0].mxu1  ;;  %v1948_v35 = vpop.f32.mrb[1].mxu0 }
 0x253   : > { %v861_v36 = vadd.f32 %v860_v33, %v805_v32  ;;  %v1956_v37 = vpop.f32.mrb[1].mxu1  ;;  %v808_v38 = vpop.f32.mrb[2].mxu0  ;;  %v2149_v35 = vmov 0  }
 0x254   : > { %v863_v39 = vpop.f32.mrb[2].mxu1  ;;  %v1949_v40 = vpop.f32.mrb[3].mxu0  ;;  %2047 = vset.pattern.permute.xlu1 %v2149_v35  ;;  %2048 = vset.pattern.permute.xlu0 %v2149_v35 }
 0x255   : > { %v873_v41 = vadd.f32 %v1866_v34, %v861_v36  ;;  %v1957_v42 = vpop.f32.mrb[3].mxu1  ;;  %v2150_v36 = vmov 1966171168   ;;  %v2400_v39 = vshrl.u32 %v609_v1, 7  ;;  %v1876_v40 = vld [vmem:[%s2581_s11] ss:$0 sm:$0xff] }
 0x256   : > { %v1164_v37 = vunpack.c.l.s4 %v2150_v36  ;;  %v1155_v1 = vld [vmem:[%s2572_s2 + $0x8] sm:$0xff] }
 0x257   : > { %2063 = vtanh.f32 %v873_v41  ;;  %v1867_v45 = vmul.f32 -1.442695, %v873_v41 }
 0x258   : > { %v1165_v38 = vunpack.c.0.s8 %v1164_v37  ;;  %v1881_v37 = vld [vmem:[#allocation8] ss:$0 sm:$0xff] }
 0x259   : > { %2065 = vpow2.f32 %v1867_v45 }
 0x25a   : > { %v963_v4 = vpop.f32.mrb[4].mxu0  ;;  %v1168_v41 = vsub.s32 %v1165_v38, %v2400_v39 }
 0x25b   : > { %v1964_v5 = vpop.f32.mrb[5].mxu0 }
 0x25c   : > { %v966_v6 = vpop.f32.mrb[6].mxu0  ;;  %v1160_v5 = vld [vmem:[%s2572_s2 + $0x30] sm:$0xff] }
 0x25d   : > { %v1965_v7 = vpop.f32.mrb[7].mxu0 }
 0x25e   : > { %v1161_v7 = vld [vmem:[%s2572_s2 + $0x38] sm:$0xff] }
 0x261   : > { %v2064_v43 = vpop.eup %2063 }
 0x262   : > { %887 = vrot.lane.b32.xlu0 %v2064_v43, %s2147_s17 }
 0x263   : > { %v2066_v46 = vpop.eup %2065 }
 0x264   : > { %v877_v47 = vadd.f32 1.0, %v2066_v46 }
 0x266   : > { %882 = vrot.lane.b32.xlu0 %v744_v44, %s2587_s19  ;;  %2067 = vrcp.f32 %v877_v47  ;;  %v2407_v47 = vsub.s32 0, %v2400_v39 }
 0x270   : > { %v2068_v48 = vpop.eup %2067 }
 0x2d4   : > { %v888_v49 = vpop.permute.xlu0 %887 }
 0x2d5   : > { %v890_v50 = vmul.f32 %v2068_v48, %v888_v49 }
 0x2d7   : > { %892 = vrot.lane.b32.xlu1 %v890_v50, %s2587_s19 }
 0x2d8   : > { %v883_v51 = vpop.permute.xlu0 %882 }
 0x2d9   : > { %v885_v52 = vmul.f32 %v2068_v48, %v883_v51  ;;  %v1154_v51 = vld [vmem:[%s2572_s2] sm:$0xff] }
 0x349   : > { %v893_v53 = vpop.permute.xlu1 %892 }
 0x34a   : > { %v2342_v54 = vadd.f32 %v893_v53, %v885_v52  ;;  %v1156_v52 = vld [vmem:[%s2572_s2 + $0x10] sm:$0xff] }
 0x34c   : > { %2069 = vtanh.f32 %v2342_v54 }
 0x356   : > { %v2070_v61 = vpop.eup %2069 }
 0x357   : > { %898 = vrot.lane.b32.xlu1 %v2070_v61, %s2147_s17 }
 0x3c9   : > { %v899_v62 = vpop.permute.xlu1 %898 }
 0x3ca   : > { %v2365_v63 = vmul.f32 %v2068_v48, %v899_v62  ;;  %v1159_v62 = vld [vmem:[%s2572_s2 + $0x28] sm:$0xff] }
 0x3cc   : > { %v904_v0 = vpack.c.bf16 %v2365_v63, %v2365_v63 }
 0x3ce   : > { %970 = vrot.lane.b32.xlu0 %v904_v0, %s2587_s19 }
 0x3d2   : > { %1043 = vrot.lane.b32.xlu0 %v903_v3, %s2587_s19 }
 0x440   : > { %v971_v8 = vpop.permute.xlu0 %970 }
 0x441   : > { %1971 = vmatmul.mubr.msk.bf16.vlgmr.msra.gmra.mrb[4].mxu1 %vm767_vm7, %v971_v8  ;;  %v1880_v8 = vld [vmem:[%s2582_s12] ss:$0 sm:$0xff] }
 0x442   : > { %1986 = vmatprep.mubr.msk.bf16.mxu1 %vm2146_vm6, %v2145_v24 }
 0x444   : > { %v1044_v23 = vpop.permute.xlu0 %1043 }
 0x514   : > { %v1021_v9 = vpop.f32.mrb[4].mxu1 }
 0x515   : > { %v1022_v11 = vadd.f32 %v1021_v9, %v963_v4  ;;  %v1972_v12 = vpop.f32.mrb[5].mxu1 }
 0x516   : > { %v1024_v13 = vpop.f32.mrb[6].mxu1 }
 0x517   : > { %v1034_v14 = vadd.f32 %v1874_v10, %v1022_v11  ;;  %v1973_v15 = vpop.f32.mrb[7].mxu1 }
 0x519   : > { %2071 = vtanh.f32 %v1034_v14  ;;  %v1875_v17 = vmul.f32 -1.442695, %v1034_v14 }
 0x51b   : > { %2073 = vpow2.f32 %v1875_v17 }
 0x523   : > { %v2072_v16 = vpop.eup %2071 }
 0x524   : > { %1048 = vrot.lane.b32.xlu1 %v2072_v16, %s2147_s17 }
 0x525   : > { %v2074_v18 = vpop.eup %2073 }
 0x526   : > { %v1038_v19 = vadd.f32 1.0, %v2074_v18 }
 0x528   : > { %2075 = vrcp.f32 %v1038_v19 }
 0x532   : > { %v2076_v20 = vpop.eup %2075 }
 0x533   : > { %v1046_v25 = vmul.f32 %v2076_v20, %v1044_v23 }
 0x596   : > { %v1049_v21 = vpop.permute.xlu1 %1048 }
 0x597   : > { %v1051_v22 = vmul.f32 %v2076_v20, %v1049_v21 }
 0x599   : > { %1053 = vrot.lane.b32.xlu1 %v1051_v22, %s2587_s19 }
 0x60b   : > { %v1054_v26 = vpop.permute.xlu1 %1053 }
 0x60c   : > { %v2379_v27 = vadd.f32 %v1054_v26, %v1046_v25 }
 0x60e   : > { %2077 = vtanh.f32 %v2379_v27 }
 0x618   : > { %v2078_v30 = vpop.eup %2077 }
 0x619   : > { %1059 = vrot.lane.b32.xlu0 %v2078_v30, %s2147_s17  ;;  %s2591_s17 = smov 32  }
 0x68b   : > { %v1060_v31 = vpop.permute.xlu0 %1059 }
 0x68c   : > { %v2391_v32 = vmul.f32 %v2076_v20, %v1060_v31 }
 0x68e   : > { %v1084_v33 = vpack.c.bf16 %v2391_v32, %v2391_v32 }
 0x690   : > { %1097 = vrot.lane.b32.xlu1 %v1084_v33, %s2587_s19 }
 0x702   : > { %v1098_v34 = vpop.permute.xlu1 %1097 }
 0x703   : > { %1979 = vmatmul.mubr.msk.bf16.vlgmr.msra.gmra.mrb[8].mxu0 %vm767_vm7, %v1098_v34 }
 0x704   : > { %1994 = vmatprep.mubr.msk.bf16.mxu0 %vm2146_vm6, %v2145_v24 }
 0x7d6   : > { %v1148_v42 = vpop.f32.mrb[8].mxu0 }
 0x7d7   : > { %v1149_v43 = vadd.f32 %v1876_v40, %v1148_v42  ;;  %v1980_v44 = vpop.f32.mrb[9].mxu0 }
 0x7d8   : > { %v1151_v45 = vpop.f32.mrb[10].mxu0  ;;  %v1281_v44 = vadd.s32 4294967288, %v2264_v2 }
 0x7d9   : > { %v1169_v46 = vrot.slane %v1149_v43, %v1168_v41  ;;  %v1981_v48 = vpop.f32.mrb[11].mxu0  ;;  %v1288_v43 = vadd.s32 4294967280, %v2264_v2 }
 0x7db   : > { %v1170_v49 = vcombine.high %v1169_v46, %v1169_v46  ;;  %v1177_v50 = vrot.slane %v1169_v46, %v1168_v41  ;;  %v2449_v48 = vsub.s32 %v1288_v43, %v2400_v39 }
 0x7dd   : > { %v1184_v53 = vrot.slane %v1170_v49, %v1168_v41  ;;  %v1188_v55 = vrot.slane %v1177_v50, %v2407_v47  ;;  %v1295_v49 = vadd.s32 4294967272, %v2264_v2  ;;  %v2454_v50 = vsub.s32 %v2264_v2, %v2400_v39 }
 0x7df   : > { %v1192_v58 = vrot.slane %v1184_v53, %v2407_v47  ;;  %v1196_v59 = vadd.f32 %v1188_v55, %v1155_v1  ;;  %v1195_v60 = vadd.f32 %v1188_v55, %v1154_v51  ;;  %v1197_v61 = vadd.f32 %v1188_v55, %v1156_v52 }
 0x7e0   : > { %v1198_v3 = vadd.f32 %v1188_v55, %v1157_v57  ;;  %v2457_v1 = vsub.s32 %v1281_v44, %v2400_v39 }
 0x7e1   : > { %2079 = vtanh.f32 %v1196_v59  ;;  %v1199_v0 = vadd.f32 %v1192_v58, %v1158_v56  ;;  %v1200_v4 = vadd.f32 %v1192_v58, %v1159_v62  ;;  %v1201_v6 = vadd.f32 %v1192_v58, %v1160_v5 }
 0x7e2   : > { %2081 = vtanh.f32 %v1195_v60  ;;  %v1202_v9 = vadd.f32 %v1192_v58, %v1161_v7  ;;  %v2460_v60 = vsub.s32 %v1295_v49, %v2400_v39 }
 0x7e3   : > { %2083 = vtanh.f32 %v1197_v61 }
 0x7e4   : > { %2085 = vtanh.f32 %v1199_v0 }
 0x7e5   : > { %2087 = vtanh.f32 %v1198_v3 }
 0x7e6   : > { %2089 = vtanh.f32 %v1200_v4 }
 0x7e7   : > { %2091 = vtanh.f32 %v1201_v6 }
 0x7e8   : > { %2093 = vtanh.f32 %v1202_v9 }
 0x7eb   : > { %v2080_v10 = vpop.eup %2079 }
 0x7ec   : > { %v2082_v11 = vpop.eup %2081  ;;  %v1219_v12 = vmul.f32 %v2080_v10, %v1880_v8 }
 0x7ed   : > { %v2084_v13 = vpop.eup %2083  ;;  %v1218_v14 = vmul.f32 %v2082_v11, %v1880_v8 }
 0x7ee   : > { %v2086_v15 = vpop.eup %2085  ;;  %v1230_v16 = vsel %vm1226_vm8, %v1219_v12, 0.0  ;;  %v1220_v17 = vmul.f32 %v2084_v13, %v1880_v8 }
 0x7ef   : > { %v2088_v18 = vpop.eup %2087  ;;  %1231 = vadd.xlane.f32.xlu1 %v1230_v16  ;;  %v1227_v19 = vsel %vm1226_vm8, %v1218_v14, 0.0  ;;  %v1222_v20 = vmul.f32 %v2086_v15, %v1880_v8 }
 0x7f0   : > { %v2090_v21 = vpop.eup %2089  ;;  %1228 = vadd.xlane.f32.xlu0 %v1227_v19  ;;  %v1233_v22 = vsel %vm1226_vm8, %v1220_v17, 0.0  ;;  %v1221_v23 = vmul.f32 %v2088_v18, %v1880_v8  ;;  %v1334_v19 = vsub.s32 1, %v2400_v39 }
 0x7f1   : > { %v1239_v25 = vsel %vm1226_vm8, %v1222_v20, 0.0  ;;  %v1223_v26 = vmul.f32 %v2090_v21, %v1880_v8  ;;  %v2092_v28 = vpop.eup %2091 }
 0x7f2   : > { %v1236_v29 = vsel %vm1226_vm8, %v1221_v23, 0.0  ;;  %v1224_v31 = vmul.f32 %v2092_v28, %v1880_v8  ;;  %v2094_v33 = vpop.eup %2093 }
 0x7f3   : > { %1234 = vadd.xlane.f32.xlu1 %v1233_v22  ;;  %v1242_v30 = vsel %vm1226_vm8, %v1223_v26, 0.0  ;;  %v1225_v35 = vmul.f32 %v2094_v33, %v1880_v8 }
 0x7f4   : > { %1240 = vadd.xlane.f32.xlu0 %v1239_v25  ;;  %v1245_v34 = vsel %vm1226_vm8, %v1224_v31, 0.0 }
 0x7f5   : > { %v1248_v36 = vsel %vm1226_vm8, %v1225_v35, 0.0 }
 0x7f7   : > { %1237 = vadd.xlane.f32.xlu1 %v1236_v29 }
 0x7f8   : > { %1243 = vadd.xlane.f32.xlu0 %v1242_v30 }
 0x7fc   : > { %1246 = vadd.xlane.f32.xlu0 %v1245_v34 }
 0x800   : > { %1249 = vadd.xlane.f32.xlu0 %v1248_v36 }
 0x808   : > { %1258 = vperm.xlu1 %2047, %v1881_v37  }
 0x87c   : > { %v1232_v38 = vpop.xlane.xlu1 %1231 }
 0x87d   : > { %v1229_v40 = vpop.xlane.xlu0 %1228 }
 0x880   : > { %v1235_v41 = vpop.xlane.xlu1 %1234 }
 0x881   : > { %v1241_v42 = vpop.xlane.xlu0 %1240 }
 0x884   : > { %v1238_v45 = vpop.xlane.xlu1 %1237 }
 0x885   : > { %v1244_v46 = vpop.xlane.xlu0 %1243 }
 0x888   : > { %v1259_v51 = vpop.permute.xlu1 %1258 }
 0x889   : > { %v1247_v52 = vpop.xlane.xlu0 %1246  ;;  %v1261_v53 = vadd.f32 %v1259_v51, %v1229_v40  ;;  %v1262_v55 = vadd.f32 %v1259_v51, %v1232_v38  ;;  %v1263_v56 = vadd.f32 %v1259_v51, %v1235_v41  ;;  %v1265_v58 = vadd.f32 %v1259_v51, %v1241_v42 }
 0x88a   : > { %v1267_v57 = vadd.f32 %v1259_v51, %v1247_v52  ;;  %v1266_v59 = vadd.f32 %v1259_v51, %v1244_v46  ;;  %v1264_v3 = vadd.f32 %v1259_v51, %v1238_v45 }
 0x88b   : > { %v1280_v61 = vrot.slane %v1261_v53, %v2454_v50  ;;  %v1285_v62 = vrot.slane %v1262_v55, %v2457_v1  ;;  %v1292_v0 = vrot.slane %v1263_v56, %v2449_v48  ;;  %v1305_v4 = vrot.slane %v1265_v58, %v2454_v50 }
 0x88c   : > { %v1309_v5 = vrot.slane %v1266_v59, %v2457_v1  ;;  %v1314_v6 = vrot.slane %v1267_v57, %v2449_v48  ;;  %v1299_v13 = vrot.slane %v1264_v3, %v2460_v60 }
 0x88d   : > { %v1250_v7 = vpop.xlane.xlu0 %1249  ;;  %v1287_v8 = vsel %vm1286_vm9, %v1285_v62, %v1280_v61 }
 0x88e   : > { %v1268_v9 = vadd.f32 %v1259_v51, %v1250_v7  ;;  %v1310_v10 = vsel %vm1286_vm9, %v1309_v5, %v1305_v4  ;;  %v1294_v11 = vsel %vm1293_vm10, %v1292_v0, %v1287_v8 }
 0x88f   : > { %v1315_v14 = vsel %vm1293_vm10, %v1314_v6, %v1310_v10  ;;  %v1301_v15 = vsel %vm1300_vm11, %v1299_v13, %v1294_v11 }
 0x890   : > { %v1319_v12 = vrot.slane %v1268_v9, %v2460_v60 }
 0x892   : > { %v1320_v16 = vsel %vm1300_vm11, %v1319_v12, %v1315_v14 }
 0x893   : > { %v1322_v17 = vsel %vm1321_vm12, %v1320_v16, %v1301_v15 }
 0x894   : > { %v1324_v18 = vsel %vm1067_vm13, %v1322_v17, -inf }
 0x895   : > { %1325 = vmax.xlane.f32.xlu0 %v1324_v18 }
 0x922   : > { %v1326_v20 = vpop.xlane.xlu0 %1325 }
 0x923   : > { %v1331_v21 = vrot.slane %v1326_v20, %v2407_v47  ;;  %v1335_v22 = vrot.slane %v1326_v20, %v1334_v19 }
 0x925   : > { %v1338_v23 = vsub.f32 %v1261_v53, %v1331_v21  ;;  %v1339_v25 = vsub.f32 %v1262_v55, %v1331_v21  ;;  %v1342_v26 = vsub.f32 %v1265_v58, %v1335_v22  ;;  %v1343_v30 = vsub.f32 %v1266_v59, %v1335_v22 }
 0x926   : > { %v1340_v33 = vsub.f32 %v1263_v56, %v1331_v21  ;;  %v1344_v35 = vsub.f32 %v1267_v57, %v1335_v22  ;;  %v1341_v40 = vsub.f32 %v1264_v3, %v1331_v21  ;;  %v1345_v43 = vsub.f32 %v1268_v9, %v1335_v22 }
 0x927   : > { %v1346_v28 = vmul.f32 1.442695, %v1338_v23  ;;  %v1348_v29 = vmul.f32 1.442695, %v1339_v25  ;;  %v1354_v31 = vmul.f32 1.442695, %v1342_v26 }
 0x928   : > { %v1356_v34 = vmul.f32 1.442695, %v1343_v30  ;;  %v1350_v36 = vmul.f32 1.442695, %v1340_v33  ;;  %v1358_v41 = vmul.f32 1.442695, %v1344_v35 }
 0x929   : > { %2095 = vpow2.f32 %v1346_v28  ;;  %v1352_v44 = vmul.f32 1.442695, %v1341_v40  ;;  %v1360_v46 = vmul.f32 1.442695, %v1345_v43 }
 0x92a   : > { %2097 = vpow2.f32 %v1348_v29 }
 0x92b   : > { %2099 = vpow2.f32 %v1354_v31 }
 0x92c   : > { %2101 = vpow2.f32 %v1356_v34 }
 0x92d   : > { %2103 = vpow2.f32 %v1350_v36 }
 0x92e   : > { %2105 = vpow2.f32 %v1358_v41 }
 0x92f   : > { %2107 = vpow2.f32 %v1352_v44 }
 0x930   : > { %2109 = vpow2.f32 %v1360_v46  ;;  %v2059_v46 = vld [vmem:[%s2573_s3 + $0x10] sm:$0xff]  }
 0x931   : > { %1991 = vmatpush3.bf16.msra.mxu0 %v2059_v46 }
 0x932   : > { %1992 = vmatprep.subr.bf16.mxu0 %v2145_v24 }
 0x933   : > { %v2482_v37 = vpop.eup %2095 }
 0x934   : > { %v2484_v38 = vpop.eup %2097  ;;  %1371 = vperm.xlu0 %2048, %v2482_v37  }
 0x935   : > { %1374 = vperm.xlu1 %2047, %v2484_v38   ;;  %v2100_v42 = vpop.eup %2099 }
 0x936   : > { %v2102_v45 = vpop.eup %2101 }
 0x937   : > { %v2104_v49 = vpop.eup %2103 }
 0x938   : > { %v2106_v51 = vpop.eup %2105 }
 0x939   : > { %1383 = vperm.xlu1 %2047, %v2100_v42   ;;  %v2108_v52 = vpop.eup %2107 }
 0x93a   : > { %v2110_v53 = vpop.eup %2109 }
 0x93d   : > { %1386 = vperm.xlu1 %2047, %v2102_v45  }
 0x941   : > { %1377 = vperm.xlu1 %2047, %v2104_v49  }
 0x945   : > { %1389 = vperm.xlu1 %2047, %v2106_v51  }
 0x949   : > { %1380 = vperm.xlu1 %2047, %v2108_v52  }
 0x94d   : > { %1392 = vperm.xlu1 %2047, %v2110_v53  }
 0x9b3   : > { %v1372_v61 = vpop.permute.xlu0 %1371 }
 0x9b4   : > { %v1375_v55 = vpop.permute.xlu1 %1374  ;;  %v1397_v3 = vrot.slane %v1372_v61, %v2454_v50 }
 0x9b5   : > { %v1401_v0 = vrot.slane %v1375_v55, %v2457_v1 }
 0x9b7   : > { %v1402_v10 = vsel %vm1286_vm9, %v1401_v0, %v1397_v3 }
 0x9b8   : > { %v1384_v56 = vpop.permute.xlu1 %1383 }
 0x9b9   : > { %v1416_v7 = vrot.slane %v1384_v56, %v2454_v50 }
 0x9bc   : > { %v1387_v57 = vpop.permute.xlu1 %1386 }
 0x9bd   : > { %v1420_v4 = vrot.slane %v1387_v57, %v2457_v1 }
 0x9bf   : > { %v1421_v11 = vsel %vm1286_vm9, %v1420_v4, %v1416_v7 }
 0x9c0   : > { %v1378_v58 = vpop.permute.xlu1 %1377 }
 0x9c1   : > { %v1406_v5 = vrot.slane %v1378_v58, %v2449_v48 }
 0x9c3   : > { %v1407_v13 = vsel %vm1293_vm10, %v1406_v5, %v1402_v10 }
 0x9c4   : > { %v1390_v59 = vpop.permute.xlu1 %1389 }
 0x9c5   : > { %v1425_v6 = vrot.slane %v1390_v59, %v2449_v48 }
 0x9c7   : > { %v1426_v14 = vsel %vm1293_vm10, %v1425_v6, %v1421_v11 }
 0x9c8   : > { %v1381_v62 = vpop.permute.xlu1 %1380 }
 0x9c9   : > { %v1411_v8 = vrot.slane %v1381_v62, %v2460_v60 }
 0x9cb   : > { %v1412_v15 = vsel %vm1300_vm11, %v1411_v8, %v1407_v13 }
 0x9cc   : > { %v1393_v9 = vpop.permute.xlu1 %1392 }
 0x9cd   : > { %v1430_v12 = vrot.slane %v1393_v9, %v2460_v60 }
 0x9cf   : > { %v1431_v16 = vsel %vm1300_vm11, %v1430_v12, %v1426_v14 }
 0x9d0   : > { %v1432_v17 = vsel %vm1321_vm12, %v1431_v16, %v1412_v15 }
 0x9d1   : > { %v1434_v18 = vsel %vm1067_vm13, %v1432_v17, 0.0 }
 0x9d2   : > { %1435 = vadd.xlane.f32.xlu1 %v1434_v18 }
 0xa5f   : > { %v1436_v20 = vpop.xlane.xlu1 %1435 }
 0xa60   : > { %v1445_v21 = vrot.slane %v1436_v20, %v1334_v19  ;;  %v1441_v22 = vrot.slane %v1436_v20, %v2407_v47 }
 0xa62   : > { %2111 = vrcp.f32 %v1445_v21 }
 0xa63   : > { %2113 = vrcp.f32 %v1441_v22 }
 0xa6c   : > { %v2112_v23 = vpop.eup %2111 }
 0xa6d   : > { %v1454_v25 = vmul.f32 %v2112_v23, %v2100_v42  ;;  %v1455_v26 = vmul.f32 %v2112_v23, %v2102_v45  ;;  %v1456_v30 = vmul.f32 %v2112_v23, %v2106_v51  ;;  %v1457_v31 = vmul.f32 %v2112_v23, %v2110_v53  ;;  %v2114_v33 = vpop.eup %2113  ;;  %v2061_v51 = vld [vmem:[%s2573_s3] sm:$0xff]  }
 0xa6e   : > { %v1449_v36 = vmul.f32 %v2114_v33, %v2482_v37  ;;  %v1450_v39 = vmul.f32 %v2114_v33, %v2484_v38  ;;  %v1451_v42 = vmul.f32 %v2114_v33, %v2104_v49  ;;  %v1452_v43 = vmul.f32 %v2114_v33, %v2108_v52  ;;  %v2060_v38 = vld [vmem:[%s2573_s3 + $0x18] sm:$0xff]   ;;  %1983 = vmatpush3.bf16.msra.mxu1 %v2061_v51  ;;  %v2062_v52 = vld [vmem:[%s2573_s3 + $0x8] sm:$0xff]  }
 0xa6f   : > { %v1460_v28 = vpack.c.bf16 %v1455_v26, %v1454_v25  ;;  %v1461_v35 = vpack.c.bf16 %v1457_v31, %v1456_v30  ;;  %1993 = vmatpush3.bf16.msra.mxu0 %v2060_v38  ;;  %1984 = vmatprep.subr.bf16.mxu1 %v2145_v24  ;;  %v1678_v31 = vcvt.s32.f32 %v2264_v2 }
 0xa70   : > { %v1458_v40 = vpack.c.bf16 %v1450_v39, %v1449_v36  ;;  %v1459_v45 = vpack.c.bf16 %v1452_v43, %v1451_v42 }
 0xa71   : > { %v1565_v29 = vunpack.c.l.b16 %v1460_v28  ;;  %v1566_v34 = vunpack.c.h.b16 %v1460_v28  ;;  %v1567_v19 = vunpack.c.l.b16 %v1461_v35  ;;  %v1568_v44 = vunpack.c.h.b16 %v1461_v35 }
 0xa72   : > { %v1472_v47 = vunpack.c.l.b16 %v1458_v40  ;;  %v1473_v41 = vunpack.c.h.b16 %v1458_v40  ;;  %v1474_v37 = vunpack.c.l.b16 %v1459_v45  ;;  %v1475_v49 = vunpack.c.h.b16 %v1459_v45  ;;  %1985 = vmatpush3.bf16.msra.mxu1 %v2062_v52 }
 0xa73   : > { %1570 = vperm.xlu0 %2048, %v1565_v29  }
 0xa77   : > { %1573 = vperm.xlu0 %2048, %v1566_v34  }
 0xa7b   : > { %1576 = vperm.xlu0 %2048, %v1567_v19   ;;  %v2152_v19 = vmov (!%p1847_p5), 10  }
 0xa7f   : > { %1477 = vperm.xlu0 %2048, %v1472_v47  }
 0xa83   : > { %1480 = vperm.xlu0 %2048, %v1473_v41  }
 0xa87   : > { %1579 = vperm.xlu0 %2048, %v1568_v44  }
 0xa8b   : > { %1483 = vperm.xlu0 %2048, %v1474_v37  }
 0xa8f   : > { %1486 = vperm.xlu0 %2048, %v1475_v49  }
 0xaf2   : > { %v1571_v53 = vpop.permute.xlu0 %1570 }
 0xaf3   : > { %v1584_v62 = vrot.slane %v1571_v53, %v2454_v50 }
 0xaf6   : > { %v1574_v55 = vpop.permute.xlu0 %1573 }
 0xaf7   : > { %v1588_v59 = vrot.slane %v1574_v55, %v2457_v1 }
 0xaf9   : > { %v1589_v3 = vsel %vm1286_vm9, %v1588_v59, %v1584_v62 }
 0xafa   : > { %v1577_v56 = vpop.permute.xlu0 %1576 }
 0xafb   : > { %v1593_v61 = vrot.slane %v1577_v56, %v2449_v48 }
 0xafd   : > { %v1594_v4 = vsel %vm1293_vm10, %v1593_v61, %v1589_v3 }
 0xafe   : > { %v1478_v57 = vpop.permute.xlu0 %1477 }
 0xaff   : > { %v1491_v10 = vrot.slane %v1478_v57, %v2454_v50 }
 0xb02   : > { %v1481_v58 = vpop.permute.xlu0 %1480 }
 0xb03   : > { %v1495_v8 = vrot.slane %v1481_v58, %v2457_v1 }
 0xb05   : > { %v1496_v12 = vsel %vm1286_vm9, %v1495_v8, %v1491_v10 }
 0xb06   : > { %v1580_v0 = vpop.permute.xlu0 %1579 }
 0xb07   : > { %v1598_v24 = vrot.slane %v1580_v0, %v2460_v60 }
 0xb09   : > { %v1599_v5 = vsel %vm1300_vm11, %v1598_v24, %v1594_v4 }
 0xb0a   : > { %v1600_v6 = vpack.c.b16 %v1599_v5, %v1599_v5  ;;  %v1484_v7 = vpop.permute.xlu0 %1483 }
 0xb0b   : > { %v1500_v9 = vrot.slane %v1484_v7, %v2449_v48  ;;  %v1888_v48 = vld [vmem:[%s2584_s14] ss:$0 sm:$0xff] }
 0xb0c   : > { %1995 = vmatmul.mubr.msk.bf16.vlgmr.msra.gmra.mrb[12].mxu0 %vm767_vm7, %v1600_v6 }
 0xb0d   : > { %v1501_v14 = vsel %vm1293_vm10, %v1500_v9, %v1496_v12 }
 0xb0e   : > { %v1487_v11 = vpop.permute.xlu0 %1486 }
 0xb0f   : > { %v1505_v13 = vrot.slane %v1487_v11, %v2460_v60 }
 0xb11   : > { %v1506_v15 = vsel %vm1300_vm11, %v1505_v13, %v1501_v14 }
 0xb12   : > { %v1507_v16 = vpack.c.b16 %v1506_v15, %v1506_v15 }
 0xb14   : > { %1987 = vmatmul.mubr.msk.bf16.vlgmr.msra.gmra.mrb[8].mxu1 %vm767_vm7, %v1507_v16 }
 0xbdf   : > { %v1650_v17 = vpop.f32.mrb[12].mxu0 }
 0xbe0   : > { %v1996_v1 = vpop.f32.mrb[13].mxu0  ;;  %v1664_v20 = vadd.f32 %v1888_v48, %v1650_v17 }
 0xbe1   : > { %v1653_v50 = vpop.f32.mrb[14].mxu0 }
 0xbe2   : > { %v1997_v18 = vpop.f32.mrb[15].mxu0  ;;  %v1667_v22 = vrot.slane %v1664_v20, 7 }
 0xbe7   : > { %v1557_v21 = vpop.f32.mrb[8].mxu1 }
 0xbe8   : > { %v1663_v60 = vadd.f32 %v1888_v48, %v1557_v21  ;;  %v1988_v23 = vpop.f32.mrb[9].mxu1 }
 0xbe9   : > { %v1560_v25 = vpop.f32.mrb[10].mxu1 }
 0xbea   : > { %v1989_v26 = vpop.f32.mrb[11].mxu1  ;;  %v1668_v28 = vsel %vm1321_vm12, %v1667_v22, %v1663_v60 }
 0xbeb   : > { %v1672_v29 = vsel %vm1671_vm14, %v1668_v28, -inf  ;;  %1670 = vst [vmem:[%s2269_s30] sm:$0x3] %v1668_v28 }
 0xbec   : > { %v1674_v30 = vsel %vm1673_vm15, %v1672_v29, -inf }
 0xbed   : > { %1675 = vmax.xlane.f32.xlu1 %v1674_v30 }
 0xbfe   : > { %1064 = vrot.lane.b32.xlu1 %v2365_v63, %s2591_s17 }
 0xc02   : > { %1070 = vrot.lane.b32.xlu1 %v2342_v54, %s2151_s29 }
 0xc06   : > { %1075 = vrot.lane.b32.xlu1 %v2391_v32, %s2591_s17 }
 0xc0a   : > { %1080 = vrot.lane.b32.xlu1 %v2379_v27, %s2151_s29 }
 0xc7a   : > { %v1676_v33 = vpop.xlane.xlu1 %1675 }
 0xc7b   : > { %vm1677_vm0 = vcmp.eq.f32.partialorder %v1672_v29, %v1676_v33 }
 0xc7c   : > { %v1679_v34 = vsel %vm1677_vm0, %v1678_v31, 128.0 }
 0xc7d   : > { %v1680_v35 = vsel %vm1673_vm15, %v1679_v34, inf }
 0xc7e   : > { %1681 = vmin.xlane.f32.xlu0 %v1680_v35  ;;  %v1065_v36 = vpop.permute.xlu1 %1064 }
 0xc7f   : > { %1068 = vst.msk [vmem:[#allocation2] sm:$0x3] %vm1067_vm13, %v1065_v36 }
 0xc82   : > { %v1071_v63 = vpop.permute.xlu1 %1070 }
 0xc83   : > { %1073 = vst.msk [vmem:[#allocation3] sm:$0x3] %vm1067_vm13, %v1071_v63 }
 0xc86   : > { %v1076_v54 = vpop.permute.xlu1 %1075 }
 0xc87   : > { %1078 = vst.msk [vmem:[#allocation4] sm:$0x3] %vm1067_vm13, %v1076_v54 }
 0xc8a   : > { %v1081_v32 = vpop.permute.xlu1 %1080 }
 0xc8b   : > { %1083 = vst.msk [vmem:[#allocation5] sm:$0x3] %vm1067_vm13, %v1081_v32 }
 0xd0a   : > { %1688 = sbr.rel (%p1847_p5) target bundleno = 3346 (0xd12), region = 92 }
 0xd0b   : > { %v1682_v27 = vpop.xlane.xlu0 %1681 }
 0xd0c   : > { %v1998_v2 = vtrunc.f32 %v1682_v27 }
 0xd0e   : > { %v1999_v39 = vcvt.f32.s32 %v1998_v2 }
 0xd10   : > { %1685 = vst.msk [vmem:[#allocation7] sm:$0x3] %vm1684_vm1, %v1999_v39 }
 0xd11   : > { %1689 = vst.msk [vmem:[#allocation7] sm:$0x3] %vm1684_vm1, %v2152_v19 }
 0xd12 PF:  {}
 0xd18   : > { %v1690_v40 = vld [vmem:[#allocation7] sm:$0x3] }
 0xd19   : > { %1691 = vst.msk [vmem:[%s2274_s18] sm:$0x3] %vm1684_vm1, %v1690_v40 }
 0xd1a PF: > { %s29_s25 = sadd.s32 1, %s2137_s25   ;;  %s2592_s23 = smov %s2133_s24 }
 0xd1b   : > { %p26_p7 = scmp.ge.s32.totalorder %s29_s25, 9   ;;  %s2593_s24 = smov %s2595_s13 }
 0xd1d   :  { %28 = sbr.rel (!%p26_p7) target bundleno = 3 (0x3), region = 140 }

</bundles_post_ra>
